<compile_context>
chip_gen: v6e
topology: v6e:2x2x1
jax: 0.10.0
libtpu: 0.0.40
codegen_flags: <defaults>
</compile_context>

<pallas_src>
import math

import jax
import jax.numpy as jnp
from jax.experimental import pallas as pl
from jax.experimental.pallas import tpu as pltpu


def _round_up(x, m):
    return ((x + m - 1) // m) * m


# ------------------------------ layer metadata ------------------------------

def build_meta(layers, L0, K):
    """Static per-layer descriptors.

    conv  -> ("conv",  Cin, Cout, Lin, Lout, pCin)   Lout = Lin - K + 1
    convT -> ("convT", Cin, Cout, Lin, Lout, pCin)   Lout = Lin + K - 1
    lin   -> ("lin",   In,  Out)
    pCin = round_up(Cin, 8): sublane-aligned tap stride in the im2col buffer.
    """
    meta, L = [], L0
    for t, w, _b in layers:
        if t == "lin":
            fout, fin = w.shape
            meta.append(("lin", fin, fout))
            L = fout                          # spatial length when convs resume
        elif t == "conv":
            cout, cin, _ = w.shape
            lout = L - K + 1
            meta.append(("conv", cin, cout, L, lout, _round_up(cin, 8)))
            L = lout
        else:  # convT
            cin, cout, _ = w.shape
            lout = L + K - 1
            meta.append(("convT", cin, cout, L, lout, _round_up(cin, 8)))
            L = lout
    return meta


# --------------------------- parameter packing ------------------------------

def pack_params(layers, K):
    """Fold conv/convT weights (tap blocks padded to sublane multiples, padded
    columns zero), transpose linear weights, and pack ALL arrays into a single
    2-D f32 slab read with static row offsets inside the kernel.

    conv  W(Cout,Cin,K) -> Wf(Cout, K*pCin), Wf[o, j*pCin+c] = W[o,c,j]
    convT W(Cin,Cout,K) -> Wf(Cout, K*pCin), Wf[o, j*pCin+c] = W[c,o,K-1-j]
    lin   W(Out,In)     -> W^T (In, Out)
    conv/convT bias -> (Cout, 1);  lin bias -> (1, Out)
    """
    folded = []
    for t, w, b in layers:
        if t == "lin":
            folded.append((jnp.transpose(w), b[None, :]))
        else:
            if t == "conv":
                cout, cin, _ = w.shape
                per_tap = jnp.transpose(w, (0, 2, 1))               # (Cout,K,Cin)
            else:  # convT: flipped kernel of the equivalent valid conv
                cin, cout, _ = w.shape
                per_tap = jnp.transpose(jnp.flip(w, 2), (1, 2, 0))  # (Cout,K,Cin)
            p = _round_up(cin, 8)
            wf = jnp.zeros((cout, K * p), jnp.float32)
            for j in range(K):
                wf = wf.at[:, j * p:j * p + cin].set(per_tap[:, j, :])
            folded.append((wf, b[:, None]))

    width = max(max(w.shape[1], bv.shape[1]) for w, bv in folded)
    offs, placed, r = [], [], 0
    for w, bv in folded:
        wo = _round_up(r, 8)
        r = wo + w.shape[0]
        bo = _round_up(r, 8)
        r = bo + bv.shape[0]
        offs.append((wo, bo))
        placed.append((wo, w))
        placed.append((bo, bv))

    slab = jnp.zeros((_round_up(r, 8), width), jnp.float32)
    for ro, a in placed:
        slab = slab.at[ro:ro + a.shape[0], 0:a.shape[1]].set(a)
    return slab, offs


# ----------------------------- the Pallas kernel ----------------------------

def make_kernel(meta, offs, B, K, skip_act):
    """Fused forward kernel for one batch block of size B (batch on lanes)."""
    n_layers = len(meta)

    def kernel(x_ref, slab_ref, out_ref, col_ref, trans_ref):
        # One-time zero fill: the sublane-padding rows of the im2col scratch
        # are read by the matmuls (against zero weight columns), so they must
        # never contain non-finite stale VMEM data.
        @pl.when(pl.program_id(0) == 0)
        def _():
            col_ref[...] = jnp.zeros_like(col_ref)

        h = x_ref[...]                      # (C0, B*L0), column index b*L0 + l
        batch_rows = False                  # True <=> h is (B, features)

        for li, m in enumerate(meta):
            w_off, b_off = offs[li]
            kind = m[0]

            if kind == "lin":
                _, fin, fout = m
                assert batch_rows and h.shape == (B, fin)
                w = slab_ref[w_off:w_off + fin, 0:fout]        # (In, Out)
                bv = slab_ref[b_off:b_off + 1, 0:fout]         # (1, Out)
                h = jnp.dot(h, w, preferred_element_type=jnp.float32) + bv

            else:
                _, cin, cout, lin_, lout, pcin = m
                F = K * pcin
                if batch_rows:
                    assert cin == 1 and h.shape == (B, lin_)
                else:
                    assert h.shape == (cin, B * lin_)

                # ---- im2col scatter (tap blocks sublane-aligned at j*pcin) --
                if kind == "conv":
                    # Valid conv: every used cell is overwritten, no zeroing.
                    for j in range(K):
                        for b in range(B):
                            if batch_rows:
                                src = h[b:b + 1, j:j + lout]
                            else:
                                src = h[:, b * lin_ + j:b * lin_ + j + lout]
                            col_ref[j * pcin:j * pcin + cin,
                                    b * lout:b * lout + lout] = src
                else:
                    # ConvTranspose1d == valid conv of the zero-padded input
                    # with the flipped kernel: scatter each tap at its shifted
                    # offset and zero ONLY the (K-1)-wide margins.
                    for j in range(K):
                        off = K - 1 - j
                        for b in range(B):
                            if batch_rows:
                                src = h[b:b + 1, 0:lin_]
                            else:
                                src = h[:, b * lin_:b * lin_ + lin_]
                            col_ref[j * pcin:j * pcin + cin,
                                    b * lout + off:b * lout + off + lin_] = src
                            if off > 0:    # left margin
                                col_ref[j * pcin:j * pcin + cin,
                                        b * lout:b * lout + off] = jnp.zeros(
                                            (cin, off), jnp.float32)
                            if j > 0:      # right margin
                                col_ref[j * pcin:j * pcin + cin,
                                        b * lout + off + lin_:
                                        b * lout + lout] = jnp.zeros(
                                            (cin, j), jnp.float32)

                # ---- ONE 2-D MXU matmul per conv layer (batch on lanes) ----
                w = slab_ref[w_off:w_off + cout, 0:F]          # (Cout, K*pCin)
                bv = slab_ref[b_off:b_off + cout, 0:1]         # (Cout, 1)
                xcol = col_ref[0:F, 0:B * lout]                # (F, B*Lout)
                h = jnp.dot(w, xcol, preferred_element_type=jnp.float32) + bv
                batch_rows = False

            # LeakyReLU(0.01) after every layer except the encoder tail linear
            # (followed by Dropout = identity in eval) and the final convT.
            if li not in skip_act:
                h = jnp.where(h >= 0, h, 0.01 * h)

            # conv-stack -> linear-stack transition: squeeze the single output
            # channel row into (B, L) batch-rows layout via B tiny row stores
            # through VMEM (no vector relayout).
            if kind != "lin" and li + 1 < n_layers and meta[li + 1][0] == "lin":
                lt = m[4]
                assert m[2] == 1                               # Cout must be 1
                for b in range(B):
                    trans_ref[b:b + 1, 0:lt] = h[0:1, b * lt:(b + 1) * lt]
                h = trans_ref[0:B, 0:lt]
                batch_rows = True

        out_ref[...] = h                    # (C_out, B*L_dec), lane-dense

    return kernel


# --------------------------- parameter handling ----------------------------

def init_params(key, in_ch, linear_size, feature_size, K):
    """Deterministic params in PyTorch-native layouts."""
    keys = iter(jax.random.split(key, 64))

    def u(shape, bound):
        return jax.random.uniform(next(keys), shape, jnp.float32, -bound, bound)

    def conv(cin, cout):
        bd = 1.0 / math.sqrt(cin * K)
        return ("conv", u((cout, cin, K), bd), u((cout,), bd))

    def convT(cin, cout):
        bd = 1.0 / math.sqrt(cout * K)
        return ("convT", u((cin, cout, K), bd), u((cout,), bd))

    def lin(inf, outf):
        bd = 1.0 / math.sqrt(inf)
        return ("lin", u((outf, inf), bd), u((outf,), bd))

    half = linear_size // 2
    enc = [conv(in_ch, 32), conv(32, 16), conv(16, 4), conv(4, 1),
           lin(linear_size, half), lin(half, 150), lin(150, feature_size)]
    dec = [lin(feature_size, 150), lin(150, half), lin(half, linear_size),
           convT(1, 4), conv(4, 16), convT(16, 32), convT(32, in_ch)]
    return enc, dec


# ------------------------------ pallas wrapper -----------------------------

def convae_forward(x, enc, dec, *, batch_block=None):
    N, C0, L0 = x.shape
    K = enc[0][1].shape[2]

    # Whole batch in one grid step by default.  For large N pick ~4-8 steps
    # (keeps BlockSpec double-buffering); batch_block must then keep the
    # lane-blocked columns 128-aligned, and its VMEM ceiling must be
    # re-derived for v7x's 64 MiB.
    if batch_block is None:
        batch_block = N
    assert N % batch_block == 0
    grid = (N // batch_block,)

    layers = list(enc) + list(dec)
    meta = build_meta(layers, L0, K)
    skip_act = frozenset({len(enc) - 1, len(layers) - 1})
    slab, offs = pack_params(layers, K)

    conv_meta = [m for m in meta if m[0] != "lin"]
    F_max = max(K * m[5] for m in conv_meta)        # widest padded im2col
    L_buf = max(m[4] for m in conv_meta)            # longest conv output
    assert meta[-1][0] in ("conv", "convT")
    out_c, L_dec = meta[-1][2], meta[-1][4]

    trans_L = 1                                     # conv->linear squeeze width
    for li in range(len(meta) - 1):
        if meta[li][0] != "lin" and meta[li + 1][0] == "lin":
            trans_L = max(trans_L, meta[li][4])

    if grid[0] > 1:                                 # (8,128) rule on lane blocks
        assert (batch_block * L0) % 128 == 0 and (batch_block * L_dec) % 128 == 0

    kernel = make_kernel(meta, offs, batch_block, K, skip_act)

    # Batch folded onto lanes: x_rows column index = b*L0 + l.
    x_rows = jnp.transpose(x, (1, 0, 2)).reshape(C0, N * L0)

    y_rows = pl.pallas_call(
        kernel,
        out_shape=jax.ShapeDtypeStruct((out_c, N * L_dec), jnp.float32),
        grid=grid,
        in_specs=[pl.BlockSpec((C0, batch_block * L0), lambda n: (0, n)),
                  pl.BlockSpec(slab.shape, lambda n: (0, 0))],
        out_specs=pl.BlockSpec((out_c, batch_block * L_dec), lambda n: (0, n)),
        scratch_shapes=[
            pltpu.VMEM((F_max, batch_block * L_buf), jnp.float32),  # im2col
            pltpu.VMEM((batch_block, trans_L), jnp.float32),        # conv->lin
        ],
        compiler_params=pltpu.CompilerParams(
            dimension_semantics=("parallel",)),     # v7x: shard batch blocks
    )(x_rows, slab)

    # Lane-dense kernel output (C_out, N*L_dec) -> (N, C_out, L_dec).
    return jnp.transpose(y_rows.reshape(out_c, N, L_dec), (1, 0, 2))


# ------------------------------ JAX reference ------------------------------

def ref_forward(x, enc, dec):
    def conv(h, w, b):
        y = jax.lax.conv_general_dilated(
            h, w, (1,), "VALID", dimension_numbers=("NCH", "OIH", "NCH"))
        return y + b[None, :, None]

    def convT(h, w, b):
        Kk = w.shape[2]
        wc = jnp.transpose(jnp.flip(w, 2), (1, 0, 2))
        hp = jnp.pad(h, ((0, 0), (0, 0), (Kk - 1, Kk - 1)))
        return conv(hp, wc, b)

    def lin(h, W, b):
        return jnp.einsum("ncl,ol->nco", h, W) + b

    lk = lambda v: jnp.where(v >= 0, v, 0.01 * v)
    layers = enc + dec
    h = x
    for li, (t, w, b) in enumerate(layers):
        h = {"conv": conv, "convT": convT, "lin": lin}[t](h, w, b)
        if li != len(enc) - 1 and li != len(layers) - 1:
            h = lk(h)
    return h


# ----------------------------------- main -----------------------------------

if __name__ == "__main__":
    in_ch, K, L = 4, 3, 16
    linear_size = L - 4 * (K - 1)     # length after 4 valid convs -> 8
    feature_size = 6
    N = 2

    key = jax.random.PRNGKey(0)
    kx, kp = jax.random.split(key)
    x = jax.random.normal(kx, (N, in_ch, L), jnp.float32)
    enc, dec = init_params(kp, in_ch, linear_size, feature_size, K)

    y = convae_forward(x, enc, dec)
    y = jax.block_until_ready(y)

    y_ref = ref_forward(x, enc, dec)
    assert y.shape == y_ref.shape, (y.shape, y_ref.shape)
    assert jnp.allclose(y, y_ref, atol=1e-3, rtol=1e-3), (
        float(jnp.max(jnp.abs(y - y_ref))))

    print("KERNEL_OK")
</pallas_src>

<mosaic_0001>
module attributes {stable_mosaic.version = 11 : i64} {
  func.func @kernel(%arg0: i32, %arg1: memref<4x32xf32, #tpu.memory_space<vmem>>, %arg2: memref<640x150xf32, #tpu.memory_space<vmem>>, %arg3: memref<4x24xf32, #tpu.memory_space<vmem>>, %arg4: memref<96x28xf32, #tpu.memory_space<vmem>>, %arg5: memref<2x8xf32, #tpu.memory_space<vmem>>) attributes {dimension_semantics = [#tpu.dimension_semantics<parallel>], iteration_bounds = array<i64: 1>, scalar_prefetch = 0 : i64, scratch_operands = 2 : i64, tpu.core_type = #tpu.core_type<tc>, window_params = [{transform_indices = @transform_0, window_bounds = array<i64: 4, 32>}, {pipeline_mode = #tpu.pipeline_mode<synchronous>, transform_indices = @transform_1, window_bounds = array<i64: 640, 150>}, {transform_indices = @transform_2, window_bounds = array<i64: 4, 24>}]} {
    %c0_i32 = arith.constant 0 : i32
    %0 = arith.cmpi eq, %arg0, %c0_i32 : i32
    %1 = arith.extui %0 : i1 to i32
    %c0_i32_0 = arith.constant 0 : i32
    %2 = arith.cmpi ne, %1, %c0_i32_0 : i32
    scf.if %2 {
      %cst_246 = arith.constant 0.000000e+00 : f32
      %292 = vector.broadcast %cst_246 : f32 to vector<96x28xf32>
      %c0_247 = arith.constant 0 : index
      %c0_248 = arith.constant 0 : index
      %293 = vector.load %arg4[%c0_247, %c0_248] : memref<96x28xf32, #tpu.memory_space<vmem>>, vector<96x28xf32>
      tpu.vector_store %arg4[%c0_247, %c0_248], %292 {strides = array<i32>} : memref<96x28xf32, #tpu.memory_space<vmem>>, vector<96x28xf32>,
    } else {
    }
    %c0 = arith.constant 0 : index
    %c0_1 = arith.constant 0 : index
    %3 = vector.load %arg1[%c0, %c0_1] : memref<4x32xf32, #tpu.memory_space<vmem>>, vector<4x32xf32>
    %4 = vector.extract_strided_slice %3 {offsets = [0, 0], sizes = [4, 14], strides = [1, 1]} : vector<4x32xf32> to vector<4x14xf32>
    %c0_2 = arith.constant 0 : index
    %c0_3 = arith.constant 0 : index
    %5 = vector.load %arg4[%c0_2, %c0_3] : memref<96x28xf32, #tpu.memory_space<vmem>>, vector<4x14xf32>
    tpu.vector_store %arg4[%c0_2, %c0_3], %4 {strides = array<i32>} : memref<96x28xf32, #tpu.memory_space<vmem>>, vector<4x14xf32>,
    %6 = vector.extract_strided_slice %3 {offsets = [0, 16], sizes = [4, 14], strides = [1, 1]} : vector<4x32xf32> to vector<4x14xf32>
    %c0_4 = arith.constant 0 : index
    %c14 = arith.constant 14 : index
    %7 = vector.load %arg4[%c0_4, %c14] : memref<96x28xf32, #tpu.memory_space<vmem>>, vector<4x14xf32>
    tpu.vector_store %arg4[%c0_4, %c14], %6 {strides = array<i32>} : memref<96x28xf32, #tpu.memory_space<vmem>>, vector<4x14xf32>,
    %8 = vector.extract_strided_slice %3 {offsets = [0, 1], sizes = [4, 14], strides = [1, 1]} : vector<4x32xf32> to vector<4x14xf32>
    %c8 = arith.constant 8 : index
    %c0_5 = arith.constant 0 : index
    %9 = vector.load %arg4[%c8, %c0_5] : memref<96x28xf32, #tpu.memory_space<vmem>>, vector<4x14xf32>
    tpu.vector_store %arg4[%c8, %c0_5], %8 {strides = array<i32>} : memref<96x28xf32, #tpu.memory_space<vmem>>, vector<4x14xf32>,
    %10 = vector.extract_strided_slice %3 {offsets = [0, 17], sizes = [4, 14], strides = [1, 1]} : vector<4x32xf32> to vector<4x14xf32>
    %c8_6 = arith.constant 8 : index
    %c14_7 = arith.constant 14 : index
    %11 = vector.load %arg4[%c8_6, %c14_7] : memref<96x28xf32, #tpu.memory_space<vmem>>, vector<4x14xf32>
    tpu.vector_store %arg4[%c8_6, %c14_7], %10 {strides = array<i32>} : memref<96x28xf32, #tpu.memory_space<vmem>>, vector<4x14xf32>,
    %12 = vector.extract_strided_slice %3 {offsets = [0, 2], sizes = [4, 14], strides = [1, 1]} : vector<4x32xf32> to vector<4x14xf32>
    %c16 = arith.constant 16 : index
    %c0_8 = arith.constant 0 : index
    %13 = vector.load %arg4[%c16, %c0_8] : memref<96x28xf32, #tpu.memory_space<vmem>>, vector<4x14xf32>
    tpu.vector_store %arg4[%c16, %c0_8], %12 {strides = array<i32>} : memref<96x28xf32, #tpu.memory_space<vmem>>, vector<4x14xf32>,
    %14 = vector.extract_strided_slice %3 {offsets = [0, 18], sizes = [4, 14], strides = [1, 1]} : vector<4x32xf32> to vector<4x14xf32>
    %c16_9 = arith.constant 16 : index
    %c14_10 = arith.constant 14 : index
    %15 = vector.load %arg4[%c16_9, %c14_10] : memref<96x28xf32, #tpu.memory_space<vmem>>, vector<4x14xf32>
    tpu.vector_store %arg4[%c16_9, %c14_10], %14 {strides = array<i32>} : memref<96x28xf32, #tpu.memory_space<vmem>>, vector<4x14xf32>,
    %c0_11 = arith.constant 0 : index
    %c0_12 = arith.constant 0 : index
    %16 = vector.load %arg2[%c0_11, %c0_12] : memref<640x150xf32, #tpu.memory_space<vmem>>, vector<32x24xf32>
    %c32 = arith.constant 32 : index
    %c0_13 = arith.constant 0 : index
    %17 = vector.load %arg2[%c32, %c0_13] : memref<640x150xf32, #tpu.memory_space<vmem>>, vector<32x1xf32>
    %c0_14 = arith.constant 0 : index
    %c0_15 = arith.constant 0 : index
    %18 = vector.load %arg4[%c0_14, %c0_15] : memref<96x28xf32, #tpu.memory_space<vmem>>, vector<24x28xf32>
    %cst = arith.constant dense<0.000000e+00> : vector<32x28xf32>
    %19 = tpu.matmul %16, %18, %cst {dimension_numbers = #tpu.dot_dimension_numbers<[1], [0], [0], [1], [0, 0, 1, 1], [], []>} : vector<32x24xf32>, vector<24x28xf32>, vector<32x28xf32> -> vector<32x28xf32>
    %20 = vector.broadcast %17 : vector<32x1xf32> to vector<32x28xf32>
    %21 = arith.addf %19, %20 : vector<32x28xf32>
    %cst_16 = arith.constant 0.000000e+00 : f32
    %22 = vector.broadcast %cst_16 : f32 to vector<32x28xf32>
    %23 = arith.cmpf oge, %21, %22 : vector<32x28xf32>
    %cst_17 = arith.constant 0.00999999977 : f32
    %24 = vector.broadcast %cst_17 : f32 to vector<32x28xf32>
    %25 = arith.mulf %24, %21 : vector<32x28xf32>
    %26 = arith.select %23, %21, %25 : vector<32x28xi1>, vector<32x28xf32>
    %27 = vector.extract_strided_slice %26 {offsets = [0, 0], sizes = [32, 12], strides = [1, 1]} : vector<32x28xf32> to vector<32x12xf32>
    %c0_18 = arith.constant 0 : index
    %c0_19 = arith.constant 0 : index
    %28 = vector.load %arg4[%c0_18, %c0_19] : memref<96x28xf32, #tpu.memory_space<vmem>>, vector<32x12xf32>
    tpu.vector_store %arg4[%c0_18, %c0_19], %27 {strides = array<i32>} : memref<96x28xf32, #tpu.memory_space<vmem>>, vector<32x12xf32>,
    %29 = vector.extract_strided_slice %26 {offsets = [0, 14], sizes = [32, 12], strides = [1, 1]} : vector<32x28xf32> to vector<32x12xf32>
    %c0_20 = arith.constant 0 : index
    %c12 = arith.constant 12 : index
    %30 = vector.load %arg4[%c0_20, %c12] : memref<96x28xf32, #tpu.memory_space<vmem>>, vector<32x12xf32>
    tpu.vector_store %arg4[%c0_20, %c12], %29 {strides = array<i32>} : memref<96x28xf32, #tpu.memory_space<vmem>>, vector<32x12xf32>,
    %31 = vector.extract_strided_slice %26 {offsets = [0, 1], sizes = [32, 12], strides = [1, 1]} : vector<32x28xf32> to vector<32x12xf32>
    %c32_21 = arith.constant 32 : index
    %c0_22 = arith.constant 0 : index
    %32 = vector.load %arg4[%c32_21, %c0_22] : memref<96x28xf32, #tpu.memory_space<vmem>>, vector<32x12xf32>
    tpu.vector_store %arg4[%c32_21, %c0_22], %31 {strides = array<i32>} : memref<96x28xf32, #tpu.memory_space<vmem>>, vector<32x12xf32>,
    %33 = vector.extract_strided_slice %26 {offsets = [0, 15], sizes = [32, 12], strides = [1, 1]} : vector<32x28xf32> to vector<32x12xf32>
    %c32_23 = arith.constant 32 : index
    %c12_24 = arith.constant 12 : index
    %34 = vector.load %arg4[%c32_23, %c12_24] : memref<96x28xf32, #tpu.memory_space<vmem>>, vector<32x12xf32>
    tpu.vector_store %arg4[%c32_23, %c12_24], %33 {strides = array<i32>} : memref<96x28xf32, #tpu.memory_space<vmem>>, vector<32x12xf32>,
    %35 = vector.extract_strided_slice %26 {offsets = [0, 2], sizes = [32, 12], strides = [1, 1]} : vector<32x28xf32> to vector<32x12xf32>
    %c64 = arith.constant 64 : index
    %c0_25 = arith.constant 0 : index
    %36 = vector.load %arg4[%c64, %c0_25] : memref<96x28xf32, #tpu.memory_space<vmem>>, vector<32x12xf32>
    tpu.vector_store %arg4[%c64, %c0_25], %35 {strides = array<i32>} : memref<96x28xf32, #tpu.memory_space<vmem>>, vector<32x12xf32>,
    %37 = vector.extract_strided_slice %26 {offsets = [0, 16], sizes = [32, 12], strides = [1, 1]} : vector<32x28xf32> to vector<32x12xf32>
    %c64_26 = arith.constant 64 : index
    %c12_27 = arith.constant 12 : index
    %38 = vector.load %arg4[%c64_26, %c12_27] : memref<96x28xf32, #tpu.memory_space<vmem>>, vector<32x12xf32>
    tpu.vector_store %arg4[%c64_26, %c12_27], %37 {strides = array<i32>} : memref<96x28xf32, #tpu.memory_space<vmem>>, vector<32x12xf32>,
    %c64_28 = arith.constant 64 : index
    %c0_29 = arith.constant 0 : index
    %39 = vector.load %arg2[%c64_28, %c0_29] : memref<640x150xf32, #tpu.memory_space<vmem>>, vector<16x96xf32>
    %c80 = arith.constant 80 : index
    %c0_30 = arith.constant 0 : index
    %40 = vector.load %arg2[%c80, %c0_30] : memref<640x150xf32, #tpu.memory_space<vmem>>, vector<16x1xf32>
    %c0_31 = arith.constant 0 : index
    %c0_32 = arith.constant 0 : index
    %41 = vector.load %arg4[%c0_31, %c0_32] : memref<96x28xf32, #tpu.memory_space<vmem>>, vector<96x24xf32>
    %cst_33 = arith.constant dense<0.000000e+00> : vector<16x24xf32>
    %42 = tpu.matmul %39, %41, %cst_33 {dimension_numbers = #tpu.dot_dimension_numbers<[1], [0], [0], [1], [0, 0, 1, 1], [], []>} : vector<16x96xf32>, vector<96x24xf32>, vector<16x24xf32> -> vector<16x24xf32>
    %43 = vector.broadcast %40 : vector<16x1xf32> to vector<16x24xf32>
    %44 = arith.addf %42, %43 : vector<16x24xf32>
    %cst_34 = arith.constant 0.000000e+00 : f32
    %45 = vector.broadcast %cst_34 : f32 to vector<16x24xf32>
    %46 = arith.cmpf oge, %44, %45 : vector<16x24xf32>
    %cst_35 = arith.constant 0.00999999977 : f32
    %47 = vector.broadcast %cst_35 : f32 to vector<16x24xf32>
    %48 = arith.mulf %47, %44 : vector<16x24xf32>
    %49 = arith.select %46, %44, %48 : vector<16x24xi1>, vector<16x24xf32>
    %50 = vector.extract_strided_slice %49 {offsets = [0, 0], sizes = [16, 10], strides = [1, 1]} : vector<16x24xf32> to vector<16x10xf32>
    %c0_36 = arith.constant 0 : index
    %c0_37 = arith.constant 0 : index
    %51 = vector.load %arg4[%c0_36, %c0_37] : memref<96x28xf32, #tpu.memory_space<vmem>>, vector<16x10xf32>
    tpu.vector_store %arg4[%c0_36, %c0_37], %50 {strides = array<i32>} : memref<96x28xf32, #tpu.memory_space<vmem>>, vector<16x10xf32>,
    %52 = vector.extract_strided_slice %49 {offsets = [0, 12], sizes = [16, 10], strides = [1, 1]} : vector<16x24xf32> to vector<16x10xf32>
    %c0_38 = arith.constant 0 : index
    %c10 = arith.constant 10 : index
    %53 = vector.load %arg4[%c0_38, %c10] : memref<96x28xf32, #tpu.memory_space<vmem>>, vector<16x10xf32>
    tpu.vector_store %arg4[%c0_38, %c10], %52 {strides = array<i32>} : memref<96x28xf32, #tpu.memory_space<vmem>>, vector<16x10xf32>,
    %54 = vector.extract_strided_slice %49 {offsets = [0, 1], sizes = [16, 10], strides = [1, 1]} : vector<16x24xf32> to vector<16x10xf32>
    %c16_39 = arith.constant 16 : index
    %c0_40 = arith.constant 0 : index
    %55 = vector.load %arg4[%c16_39, %c0_40] : memref<96x28xf32, #tpu.memory_space<vmem>>, vector<16x10xf32>
    tpu.vector_store %arg4[%c16_39, %c0_40], %54 {strides = array<i32>} : memref<96x28xf32, #tpu.memory_space<vmem>>, vector<16x10xf32>,
    %56 = vector.extract_strided_slice %49 {offsets = [0, 13], sizes = [16, 10], strides = [1, 1]} : vector<16x24xf32> to vector<16x10xf32>
    %c16_41 = arith.constant 16 : index
    %c10_42 = arith.constant 10 : index
    %57 = vector.load %arg4[%c16_41, %c10_42] : memref<96x28xf32, #tpu.memory_space<vmem>>, vector<16x10xf32>
    tpu.vector_store %arg4[%c16_41, %c10_42], %56 {strides = array<i32>} : memref<96x28xf32, #tpu.memory_space<vmem>>, vector<16x10xf32>,
    %58 = vector.extract_strided_slice %49 {offsets = [0, 2], sizes = [16, 10], strides = [1, 1]} : vector<16x24xf32> to vector<16x10xf32>
    %c32_43 = arith.constant 32 : index
    %c0_44 = arith.constant 0 : index
    %59 = vector.load %arg4[%c32_43, %c0_44] : memref<96x28xf32, #tpu.memory_space<vmem>>, vector<16x10xf32>
    tpu.vector_store %arg4[%c32_43, %c0_44], %58 {strides = array<i32>} : memref<96x28xf32, #tpu.memory_space<vmem>>, vector<16x10xf32>,
    %60 = vector.extract_strided_slice %49 {offsets = [0, 14], sizes = [16, 10], strides = [1, 1]} : vector<16x24xf32> to vector<16x10xf32>
    %c32_45 = arith.constant 32 : index
    %c10_46 = arith.constant 10 : index
    %61 = vector.load %arg4[%c32_45, %c10_46] : memref<96x28xf32, #tpu.memory_space<vmem>>, vector<16x10xf32>
    tpu.vector_store %arg4[%c32_45, %c10_46], %60 {strides = array<i32>} : memref<96x28xf32, #tpu.memory_space<vmem>>, vector<16x10xf32>,
    %c96 = arith.constant 96 : index
    %c0_47 = arith.constant 0 : index
    %62 = vector.load %arg2[%c96, %c0_47] : memref<640x150xf32, #tpu.memory_space<vmem>>, vector<4x48xf32>
    %c104 = arith.constant 104 : index
    %c0_48 = arith.constant 0 : index
    %63 = vector.load %arg2[%c104, %c0_48] : memref<640x150xf32, #tpu.memory_space<vmem>>, vector<4x1xf32>
    %c0_49 = arith.constant 0 : index
    %c0_50 = arith.constant 0 : index
    %64 = vector.load %arg4[%c0_49, %c0_50] : memref<96x28xf32, #tpu.memory_space<vmem>>, vector<48x20xf32>
    %cst_51 = arith.constant dense<0.000000e+00> : vector<4x20xf32>
    %65 = tpu.matmul %62, %64, %cst_51 {dimension_numbers = #tpu.dot_dimension_numbers<[1], [0], [0], [1], [0, 0, 1, 1], [], []>} : vector<4x48xf32>, vector<48x20xf32>, vector<4x20xf32> -> vector<4x20xf32>
    %66 = vector.broadcast %63 : vector<4x1xf32> to vector<4x20xf32>
    %67 = arith.addf %65, %66 : vector<4x20xf32>
    %cst_52 = arith.constant 0.000000e+00 : f32
    %68 = vector.broadcast %cst_52 : f32 to vector<4x20xf32>
    %69 = arith.cmpf oge, %67, %68 : vector<4x20xf32>
    %cst_53 = arith.constant 0.00999999977 : f32
    %70 = vector.broadcast %cst_53 : f32 to vector<4x20xf32>
    %71 = arith.mulf %70, %67 : vector<4x20xf32>
    %72 = arith.select %69, %67, %71 : vector<4x20xi1>, vector<4x20xf32>
    %73 = vector.extract_strided_slice %72 {offsets = [0, 0], sizes = [4, 8], strides = [1, 1]} : vector<4x20xf32> to vector<4x8xf32>
    %c0_54 = arith.constant 0 : index
    %c0_55 = arith.constant 0 : index
    %74 = vector.load %arg4[%c0_54, %c0_55] : memref<96x28xf32, #tpu.memory_space<vmem>>, vector<4x8xf32>
    tpu.vector_store %arg4[%c0_54, %c0_55], %73 {strides = array<i32>} : memref<96x28xf32, #tpu.memory_space<vmem>>, vector<4x8xf32>,
    %75 = vector.extract_strided_slice %72 {offsets = [0, 10], sizes = [4, 8], strides = [1, 1]} : vector<4x20xf32> to vector<4x8xf32>
    %c0_56 = arith.constant 0 : index
    %c8_57 = arith.constant 8 : index
    %76 = vector.load %arg4[%c0_56, %c8_57] : memref<96x28xf32, #tpu.memory_space<vmem>>, vector<4x8xf32>
    tpu.vector_store %arg4[%c0_56, %c8_57], %75 {strides = array<i32>} : memref<96x28xf32, #tpu.memory_space<vmem>>, vector<4x8xf32>,
    %77 = vector.extract_strided_slice %72 {offsets = [0, 1], sizes = [4, 8], strides = [1, 1]} : vector<4x20xf32> to vector<4x8xf32>
    %c8_58 = arith.constant 8 : index
    %c0_59 = arith.constant 0 : index
    %78 = vector.load %arg4[%c8_58, %c0_59] : memref<96x28xf32, #tpu.memory_space<vmem>>, vector<4x8xf32>
    tpu.vector_store %arg4[%c8_58, %c0_59], %77 {strides = array<i32>} : memref<96x28xf32, #tpu.memory_space<vmem>>, vector<4x8xf32>,
    %79 = vector.extract_strided_slice %72 {offsets = [0, 11], sizes = [4, 8], strides = [1, 1]} : vector<4x20xf32> to vector<4x8xf32>
    %c8_60 = arith.constant 8 : index
    %c8_61 = arith.constant 8 : index
    %80 = vector.load %arg4[%c8_60, %c8_61] : memref<96x28xf32, #tpu.memory_space<vmem>>, vector<4x8xf32>
    tpu.vector_store %arg4[%c8_60, %c8_61], %79 {strides = array<i32>} : memref<96x28xf32, #tpu.memory_space<vmem>>, vector<4x8xf32>,
    %81 = vector.extract_strided_slice %72 {offsets = [0, 2], sizes = [4, 8], strides = [1, 1]} : vector<4x20xf32> to vector<4x8xf32>
    %c16_62 = arith.constant 16 : index
    %c0_63 = arith.constant 0 : index
    %82 = vector.load %arg4[%c16_62, %c0_63] : memref<96x28xf32, #tpu.memory_space<vmem>>, vector<4x8xf32>
    tpu.vector_store %arg4[%c16_62, %c0_63], %81 {strides = array<i32>} : memref<96x28xf32, #tpu.memory_space<vmem>>, vector<4x8xf32>,
    %83 = vector.extract_strided_slice %72 {offsets = [0, 12], sizes = [4, 8], strides = [1, 1]} : vector<4x20xf32> to vector<4x8xf32>
    %c16_64 = arith.constant 16 : index
    %c8_65 = arith.constant 8 : index
    %84 = vector.load %arg4[%c16_64, %c8_65] : memref<96x28xf32, #tpu.memory_space<vmem>>, vector<4x8xf32>
    tpu.vector_store %arg4[%c16_64, %c8_65], %83 {strides = array<i32>} : memref<96x28xf32, #tpu.memory_space<vmem>>, vector<4x8xf32>,
    %c112 = arith.constant 112 : index
    %c0_66 = arith.constant 0 : index
    %85 = vector.load %arg2[%c112, %c0_66] : memref<640x150xf32, #tpu.memory_space<vmem>>, vector<1x24xf32>
    %c120 = arith.constant 120 : index
    %c0_67 = arith.constant 0 : index
    %86 = vector.load %arg2[%c120, %c0_67] : memref<640x150xf32, #tpu.memory_space<vmem>>, vector<1x1xf32>
    %c0_68 = arith.constant 0 : index
    %c0_69 = arith.constant 0 : index
    %87 = vector.load %arg4[%c0_68, %c0_69] : memref<96x28xf32, #tpu.memory_space<vmem>>, vector<24x16xf32>
    %cst_70 = arith.constant dense<0.000000e+00> : vector<1x16xf32>
    %88 = tpu.matmul %85, %87, %cst_70 {dimension_numbers = #tpu.dot_dimension_numbers<[1], [0], [0], [1], [0, 0, 1, 1], [], []>} : vector<1x24xf32>, vector<24x16xf32>, vector<1x16xf32> -> vector<1x16xf32>
    %89 = vector.broadcast %86 : vector<1x1xf32> to vector<1x16xf32>
    %90 = arith.addf %88, %89 : vector<1x16xf32>
    %cst_71 = arith.constant 0.000000e+00 : f32
    %91 = vector.broadcast %cst_71 : f32 to vector<1x16xf32>
    %92 = arith.cmpf oge, %90, %91 : vector<1x16xf32>
    %cst_72 = arith.constant 0.00999999977 : f32
    %93 = vector.broadcast %cst_72 : f32 to vector<1x16xf32>
    %94 = arith.mulf %93, %90 : vector<1x16xf32>
    %95 = arith.select %92, %90, %94 : vector<1x16xi1>, vector<1x16xf32>
    %96 = vector.extract_strided_slice %95 {offsets = [0, 0], sizes = [1, 8], strides = [1, 1]} : vector<1x16xf32> to vector<1x8xf32>
    %c0_73 = arith.constant 0 : index
    %c0_74 = arith.constant 0 : index
    %97 = vector.load %arg5[%c0_73, %c0_74] : memref<2x8xf32, #tpu.memory_space<vmem>>, vector<1x8xf32>
    tpu.vector_store %arg5[%c0_73, %c0_74], %96 {strides = array<i32>} : memref<2x8xf32, #tpu.memory_space<vmem>>, vector<1x8xf32>,
    %98 = vector.extract_strided_slice %95 {offsets = [0, 8], sizes = [1, 8], strides = [1, 1]} : vector<1x16xf32> to vector<1x8xf32>
    %c1 = arith.constant 1 : index
    %c0_75 = arith.constant 0 : index
    %99 = vector.load %arg5[%c1, %c0_75] : memref<2x8xf32, #tpu.memory_space<vmem>>, vector<1x8xf32>
    tpu.vector_store %arg5[%c1, %c0_75], %98 {strides = array<i32>} : memref<2x8xf32, #tpu.memory_space<vmem>>, vector<1x8xf32>,
    %c0_76 = arith.constant 0 : index
    %c0_77 = arith.constant 0 : index
    %100 = vector.load %arg5[%c0_76, %c0_77] : memref<2x8xf32, #tpu.memory_space<vmem>>, vector<2x8xf32>
    %c128 = arith.constant 128 : index
    %c0_78 = arith.constant 0 : index
    %101 = vector.load %arg2[%c128, %c0_78] : memref<640x150xf32, #tpu.memory_space<vmem>>, vector<8x4xf32>
    %c136 = arith.constant 136 : index
    %c0_79 = arith.constant 0 : index
    %102 = vector.load %arg2[%c136, %c0_79] : memref<640x150xf32, #tpu.memory_space<vmem>>, vector<1x4xf32>
    %cst_80 = arith.constant dense<0.000000e+00> : vector<2x4xf32>
    %103 = tpu.matmul %100, %101, %cst_80 {dimension_numbers = #tpu.dot_dimension_numbers<[1], [0], [0], [1], [0, 0, 1, 1], [], []>} : vector<2x8xf32>, vector<8x4xf32>, vector<2x4xf32> -> vector<2x4xf32>
    %104 = vector.broadcast %102 : vector<1x4xf32> to vector<2x4xf32>
    %105 = arith.addf %103, %104 : vector<2x4xf32>
    %cst_81 = arith.constant 0.000000e+00 : f32
    %106 = vector.broadcast %cst_81 : f32 to vector<2x4xf32>
    %107 = arith.cmpf oge, %105, %106 : vector<2x4xf32>
    %cst_82 = arith.constant 0.00999999977 : f32
    %108 = vector.broadcast %cst_82 : f32 to vector<2x4xf32>
    %109 = arith.mulf %108, %105 : vector<2x4xf32>
    %110 = arith.select %107, %105, %109 : vector<2x4xi1>, vector<2x4xf32>
    %c144 = arith.constant 144 : index
    %c0_83 = arith.constant 0 : index
    %111 = vector.load %arg2[%c144, %c0_83] : memref<640x150xf32, #tpu.memory_space<vmem>>, vector<4x150xf32>
    %c152 = arith.constant 152 : index
    %c0_84 = arith.constant 0 : index
    %112 = vector.load %arg2[%c152, %c0_84] : memref<640x150xf32, #tpu.memory_space<vmem>>, vector<1x150xf32>
    %cst_85 = arith.constant dense<0.000000e+00> : vector<2x150xf32>
    %113 = tpu.matmul %110, %111, %cst_85 {dimension_numbers = #tpu.dot_dimension_numbers<[1], [0], [0], [1], [0, 0, 1, 1], [], []>} : vector<2x4xf32>, vector<4x150xf32>, vector<2x150xf32> -> vector<2x150xf32>
    %114 = vector.broadcast %112 : vector<1x150xf32> to vector<2x150xf32>
    %115 = arith.addf %113, %114 : vector<2x150xf32>
    %cst_86 = arith.constant 0.000000e+00 : f32
    %116 = vector.broadcast %cst_86 : f32 to vector<2x150xf32>
    %117 = arith.cmpf oge, %115, %116 : vector<2x150xf32>
    %cst_87 = arith.constant 0.00999999977 : f32
    %118 = vector.broadcast %cst_87 : f32 to vector<2x150xf32>
    %119 = arith.mulf %118, %115 : vector<2x150xf32>
    %120 = arith.select %117, %115, %119 : vector<2x150xi1>, vector<2x150xf32>
    %c160 = arith.constant 160 : index
    %c0_88 = arith.constant 0 : index
    %121 = vector.load %arg2[%c160, %c0_88] : memref<640x150xf32, #tpu.memory_space<vmem>>, vector<150x6xf32>
    %c312 = arith.constant 312 : index
    %c0_89 = arith.constant 0 : index
    %122 = vector.load %arg2[%c312, %c0_89] : memref<640x150xf32, #tpu.memory_space<vmem>>, vector<1x6xf32>
    %cst_90 = arith.constant dense<0.000000e+00> : vector<2x6xf32>
    %123 = tpu.matmul %120, %121, %cst_90 {dimension_numbers = #tpu.dot_dimension_numbers<[1], [0], [0], [1], [0, 0, 1, 1], [], []>} : vector<2x150xf32>, vector<150x6xf32>, vector<2x6xf32> -> vector<2x6xf32>
    %124 = vector.broadcast %122 : vector<1x6xf32> to vector<2x6xf32>
    %125 = arith.addf %123, %124 : vector<2x6xf32>
    %c320 = arith.constant 320 : index
    %c0_91 = arith.constant 0 : index
    %126 = vector.load %arg2[%c320, %c0_91] : memref<640x150xf32, #tpu.memory_space<vmem>>, vector<6x150xf32>
    %c328 = arith.constant 328 : index
    %c0_92 = arith.constant 0 : index
    %127 = vector.load %arg2[%c328, %c0_92] : memref<640x150xf32, #tpu.memory_space<vmem>>, vector<1x150xf32>
    %cst_93 = arith.constant dense<0.000000e+00> : vector<2x150xf32>
    %128 = tpu.matmul %125, %126, %cst_93 {dimension_numbers = #tpu.dot_dimension_numbers<[1], [0], [0], [1], [0, 0, 1, 1], [], []>} : vector<2x6xf32>, vector<6x150xf32>, vector<2x150xf32> -> vector<2x150xf32>
    %129 = vector.broadcast %127 : vector<1x150xf32> to vector<2x150xf32>
    %130 = arith.addf %128, %129 : vector<2x150xf32>
    %cst_94 = arith.constant 0.000000e+00 : f32
    %131 = vector.broadcast %cst_94 : f32 to vector<2x150xf32>
    %132 = arith.cmpf oge, %130, %131 : vector<2x150xf32>
    %cst_95 = arith.constant 0.00999999977 : f32
    %133 = vector.broadcast %cst_95 : f32 to vector<2x150xf32>
    %134 = arith.mulf %133, %130 : vector<2x150xf32>
    %135 = arith.select %132, %130, %134 : vector<2x150xi1>, vector<2x150xf32>
    %c336 = arith.constant 336 : index
    %c0_96 = arith.constant 0 : index
    %136 = vector.load %arg2[%c336, %c0_96] : memref<640x150xf32, #tpu.memory_space<vmem>>, vector<150x4xf32>
    %c488 = arith.constant 488 : index
    %c0_97 = arith.constant 0 : index
    %137 = vector.load %arg2[%c488, %c0_97] : memref<640x150xf32, #tpu.memory_space<vmem>>, vector<1x4xf32>
    %cst_98 = arith.constant dense<0.000000e+00> : vector<2x4xf32>
    %138 = tpu.matmul %135, %136, %cst_98 {dimension_numbers = #tpu.dot_dimension_numbers<[1], [0], [0], [1], [0, 0, 1, 1], [], []>} : vector<2x150xf32>, vector<150x4xf32>, vector<2x4xf32> -> vector<2x4xf32>
    %139 = vector.broadcast %137 : vector<1x4xf32> to vector<2x4xf32>
    %140 = arith.addf %138, %139 : vector<2x4xf32>
    %cst_99 = arith.constant 0.000000e+00 : f32
    %141 = vector.broadcast %cst_99 : f32 to vector<2x4xf32>
    %142 = arith.cmpf oge, %140, %141 : vector<2x4xf32>
    %cst_100 = arith.constant 0.00999999977 : f32
    %143 = vector.broadcast %cst_100 : f32 to vector<2x4xf32>
    %144 = arith.mulf %143, %140 : vector<2x4xf32>
    %145 = arith.select %142, %140, %144 : vector<2x4xi1>, vector<2x4xf32>
    %c496 = arith.constant 496 : index
    %c0_101 = arith.constant 0 : index
    %146 = vector.load %arg2[%c496, %c0_101] : memref<640x150xf32, #tpu.memory_space<vmem>>, vector<4x8xf32>
    %c504 = arith.constant 504 : index
    %c0_102 = arith.constant 0 : index
    %147 = vector.load %arg2[%c504, %c0_102] : memref<640x150xf32, #tpu.memory_space<vmem>>, vector<1x8xf32>
    %cst_103 = arith.constant dense<0.000000e+00> : vector<2x8xf32>
    %148 = tpu.matmul %145, %146, %cst_103 {dimension_numbers = #tpu.dot_dimension_numbers<[1], [0], [0], [1], [0, 0, 1, 1], [], []>} : vector<2x4xf32>, vector<4x8xf32>, vector<2x8xf32> -> vector<2x8xf32>
    %149 = vector.broadcast %147 : vector<1x8xf32> to vector<2x8xf32>
    %150 = arith.addf %148, %149 : vector<2x8xf32>
    %cst_104 = arith.constant 0.000000e+00 : f32
    %151 = vector.broadcast %cst_104 : f32 to vector<2x8xf32>
    %152 = arith.cmpf oge, %150, %151 : vector<2x8xf32>
    %cst_105 = arith.constant 0.00999999977 : f32
    %153 = vector.broadcast %cst_105 : f32 to vector<2x8xf32>
    %154 = arith.mulf %153, %150 : vector<2x8xf32>
    %155 = arith.select %152, %150, %154 : vector<2x8xi1>, vector<2x8xf32>
    %156 = vector.extract_strided_slice %155 {offsets = [0, 0], sizes = [1, 8], strides = [1, 1]} : vector<2x8xf32> to vector<1x8xf32>
    %c0_106 = arith.constant 0 : index
    %c2 = arith.constant 2 : index
    %157 = vector.load %arg4[%c0_106, %c2] : memref<96x28xf32, #tpu.memory_space<vmem>>, vector<1x8xf32>
    tpu.vector_store %arg4[%c0_106, %c2], %156 {strides = array<i32>} : memref<96x28xf32, #tpu.memory_space<vmem>>, vector<1x8xf32>,
    %cst_107 = arith.constant 0.000000e+00 : f32
    %158 = vector.broadcast %cst_107 : f32 to vector<1x2xf32>
    %c0_108 = arith.constant 0 : index
    %c0_109 = arith.constant 0 : index
    %159 = vector.load %arg4[%c0_108, %c0_109] : memref<96x28xf32, #tpu.memory_space<vmem>>, vector<1x2xf32>
    tpu.vector_store %arg4[%c0_108, %c0_109], %158 {strides = array<i32>} : memref<96x28xf32, #tpu.memory_space<vmem>>, vector<1x2xf32>,
    %160 = vector.extract_strided_slice %155 {offsets = [1, 0], sizes = [1, 8], strides = [1, 1]} : vector<2x8xf32> to vector<1x8xf32>
    %c0_110 = arith.constant 0 : index
    %c12_111 = arith.constant 12 : index
    %161 = vector.load %arg4[%c0_110, %c12_111] : memref<96x28xf32, #tpu.memory_space<vmem>>, vector<1x8xf32>
    tpu.vector_store %arg4[%c0_110, %c12_111], %160 {strides = array<i32>} : memref<96x28xf32, #tpu.memory_space<vmem>>, vector<1x8xf32>,
    %cst_112 = arith.constant 0.000000e+00 : f32
    %162 = vector.broadcast %cst_112 : f32 to vector<1x2xf32>
    %c0_113 = arith.constant 0 : index
    %c10_114 = arith.constant 10 : index
    %163 = vector.load %arg4[%c0_113, %c10_114] : memref<96x28xf32, #tpu.memory_space<vmem>>, vector<1x2xf32>
    tpu.vector_store %arg4[%c0_113, %c10_114], %162 {strides = array<i32>} : memref<96x28xf32, #tpu.memory_space<vmem>>, vector<1x2xf32>,
    %164 = vector.extract_strided_slice %155 {offsets = [0, 0], sizes = [1, 8], strides = [1, 1]} : vector<2x8xf32> to vector<1x8xf32>
    %c8_115 = arith.constant 8 : index
    %c1_116 = arith.constant 1 : index
    %165 = vector.load %arg4[%c8_115, %c1_116] : memref<96x28xf32, #tpu.memory_space<vmem>>, vector<1x8xf32>
    tpu.vector_store %arg4[%c8_115, %c1_116], %164 {strides = array<i32>} : memref<96x28xf32, #tpu.memory_space<vmem>>, vector<1x8xf32>,
    %cst_117 = arith.constant 0.000000e+00 : f32
    %166 = vector.broadcast %cst_117 : f32 to vector<1x1xf32>
    %c8_118 = arith.constant 8 : index
    %c0_119 = arith.constant 0 : index
    %167 = vector.load %arg4[%c8_118, %c0_119] : memref<96x28xf32, #tpu.memory_space<vmem>>, vector<1x1xf32>
    tpu.vector_store %arg4[%c8_118, %c0_119], %166 {strides = array<i32>} : memref<96x28xf32, #tpu.memory_space<vmem>>, vector<1x1xf32>,
    %cst_120 = arith.constant 0.000000e+00 : f32
    %168 = vector.broadcast %cst_120 : f32 to vector<1x1xf32>
    %c8_121 = arith.constant 8 : index
    %c9 = arith.constant 9 : index
    %169 = vector.load %arg4[%c8_121, %c9] : memref<96x28xf32, #tpu.memory_space<vmem>>, vector<1x1xf32>
    tpu.vector_store %arg4[%c8_121, %c9], %168 {strides = array<i32>} : memref<96x28xf32, #tpu.memory_space<vmem>>, vector<1x1xf32>,
    %170 = vector.extract_strided_slice %155 {offsets = [1, 0], sizes = [1, 8], strides = [1, 1]} : vector<2x8xf32> to vector<1x8xf32>
    %c8_122 = arith.constant 8 : index
    %c11 = arith.constant 11 : index
    %171 = vector.load %arg4[%c8_122, %c11] : memref<96x28xf32, #tpu.memory_space<vmem>>, vector<1x8xf32>
    tpu.vector_store %arg4[%c8_122, %c11], %170 {strides = array<i32>} : memref<96x28xf32, #tpu.memory_space<vmem>>, vector<1x8xf32>,
    %cst_123 = arith.constant 0.000000e+00 : f32
    %172 = vector.broadcast %cst_123 : f32 to vector<1x1xf32>
    %c8_124 = arith.constant 8 : index
    %c10_125 = arith.constant 10 : index
    %173 = vector.load %arg4[%c8_124, %c10_125] : memref<96x28xf32, #tpu.memory_space<vmem>>, vector<1x1xf32>
    tpu.vector_store %arg4[%c8_124, %c10_125], %172 {strides = array<i32>} : memref<96x28xf32, #tpu.memory_space<vmem>>, vector<1x1xf32>,
    %cst_126 = arith.constant 0.000000e+00 : f32
    %174 = vector.broadcast %cst_126 : f32 to vector<1x1xf32>
    %c8_127 = arith.constant 8 : index
    %c19 = arith.constant 19 : index
    %175 = vector.load %arg4[%c8_127, %c19] : memref<96x28xf32, #tpu.memory_space<vmem>>, vector<1x1xf32>
    tpu.vector_store %arg4[%c8_127, %c19], %174 {strides = array<i32>} : memref<96x28xf32, #tpu.memory_space<vmem>>, vector<1x1xf32>,
    %176 = vector.extract_strided_slice %155 {offsets = [0, 0], sizes = [1, 8], strides = [1, 1]} : vector<2x8xf32> to vector<1x8xf32>
    %c16_128 = arith.constant 16 : index
    %c0_129 = arith.constant 0 : index
    %177 = vector.load %arg4[%c16_128, %c0_129] : memref<96x28xf32, #tpu.memory_space<vmem>>, vector<1x8xf32>
    tpu.vector_store %arg4[%c16_128, %c0_129], %176 {strides = array<i32>} : memref<96x28xf32, #tpu.memory_space<vmem>>, vector<1x8xf32>,
    %cst_130 = arith.constant 0.000000e+00 : f32
    %178 = vector.broadcast %cst_130 : f32 to vector<1x2xf32>
    %c16_131 = arith.constant 16 : index
    %c8_132 = arith.constant 8 : index
    %179 = vector.load %arg4[%c16_131, %c8_132] : memref<96x28xf32, #tpu.memory_space<vmem>>, vector<1x2xf32>
    tpu.vector_store %arg4[%c16_131, %c8_132], %178 {strides = array<i32>} : memref<96x28xf32, #tpu.memory_space<vmem>>, vector<1x2xf32>,
    %180 = vector.extract_strided_slice %155 {offsets = [1, 0], sizes = [1, 8], strides = [1, 1]} : vector<2x8xf32> to vector<1x8xf32>
    %c16_133 = arith.constant 16 : index
    %c10_134 = arith.constant 10 : index
    %181 = vector.load %arg4[%c16_133, %c10_134] : memref<96x28xf32, #tpu.memory_space<vmem>>, vector<1x8xf32>
    tpu.vector_store %arg4[%c16_133, %c10_134], %180 {strides = array<i32>} : memref<96x28xf32, #tpu.memory_space<vmem>>, vector<1x8xf32>,
    %cst_135 = arith.constant 0.000000e+00 : f32
    %182 = vector.broadcast %cst_135 : f32 to vector<1x2xf32>
    %c16_136 = arith.constant 16 : index
    %c18 = arith.constant 18 : index
    %183 = vector.load %arg4[%c16_136, %c18] : memref<96x28xf32, #tpu.memory_space<vmem>>, vector<1x2xf32>
    tpu.vector_store %arg4[%c16_136, %c18], %182 {strides = array<i32>} : memref<96x28xf32, #tpu.memory_space<vmem>>, vector<1x2xf32>,
    %c512 = arith.constant 512 : index
    %c0_137 = arith.constant 0 : index
    %184 = vector.load %arg2[%c512, %c0_137] : memref<640x150xf32, #tpu.memory_space<vmem>>, vector<4x24xf32>
    %c520 = arith.constant 520 : index
    %c0_138 = arith.constant 0 : index
    %185 = vector.load %arg2[%c520, %c0_138] : memref<640x150xf32, #tpu.memory_space<vmem>>, vector<4x1xf32>
    %c0_139 = arith.constant 0 : index
    %c0_140 = arith.constant 0 : index
    %186 = vector.load %arg4[%c0_139, %c0_140] : memref<96x28xf32, #tpu.memory_space<vmem>>, vector<24x20xf32>
    %cst_141 = arith.constant dense<0.000000e+00> : vector<4x20xf32>
    %187 = tpu.matmul %184, %186, %cst_141 {dimension_numbers = #tpu.dot_dimension_numbers<[1], [0], [0], [1], [0, 0, 1, 1], [], []>} : vector<4x24xf32>, vector<24x20xf32>, vector<4x20xf32> -> vector<4x20xf32>
    %188 = vector.broadcast %185 : vector<4x1xf32> to vector<4x20xf32>
    %189 = arith.addf %187, %188 : vector<4x20xf32>
    %cst_142 = arith.constant 0.000000e+00 : f32
    %190 = vector.broadcast %cst_142 : f32 to vector<4x20xf32>
    %191 = arith.cmpf oge, %189, %190 : vector<4x20xf32>
    %cst_143 = arith.constant 0.00999999977 : f32
    %192 = vector.broadcast %cst_143 : f32 to vector<4x20xf32>
    %193 = arith.mulf %192, %189 : vector<4x20xf32>
    %194 = arith.select %191, %189, %193 : vector<4x20xi1>, vector<4x20xf32>
    %195 = vector.extract_strided_slice %194 {offsets = [0, 0], sizes = [4, 8], strides = [1, 1]} : vector<4x20xf32> to vector<4x8xf32>
    %c0_144 = arith.constant 0 : index
    %c0_145 = arith.constant 0 : index
    %196 = vector.load %arg4[%c0_144, %c0_145] : memref<96x28xf32, #tpu.memory_space<vmem>>, vector<4x8xf32>
    tpu.vector_store %arg4[%c0_144, %c0_145], %195 {strides = array<i32>} : memref<96x28xf32, #tpu.memory_space<vmem>>, vector<4x8xf32>,
    %197 = vector.extract_strided_slice %194 {offsets = [0, 10], sizes = [4, 8], strides = [1, 1]} : vector<4x20xf32> to vector<4x8xf32>
    %c0_146 = arith.constant 0 : index
    %c8_147 = arith.constant 8 : index
    %198 = vector.load %arg4[%c0_146, %c8_147] : memref<96x28xf32, #tpu.memory_space<vmem>>, vector<4x8xf32>
    tpu.vector_store %arg4[%c0_146, %c8_147], %197 {strides = array<i32>} : memref<96x28xf32, #tpu.memory_space<vmem>>, vector<4x8xf32>,
    %199 = vector.extract_strided_slice %194 {offsets = [0, 1], sizes = [4, 8], strides = [1, 1]} : vector<4x20xf32> to vector<4x8xf32>
    %c8_148 = arith.constant 8 : index
    %c0_149 = arith.constant 0 : index
    %200 = vector.load %arg4[%c8_148, %c0_149] : memref<96x28xf32, #tpu.memory_space<vmem>>, vector<4x8xf32>
    tpu.vector_store %arg4[%c8_148, %c0_149], %199 {strides = array<i32>} : memref<96x28xf32, #tpu.memory_space<vmem>>, vector<4x8xf32>,
    %201 = vector.extract_strided_slice %194 {offsets = [0, 11], sizes = [4, 8], strides = [1, 1]} : vector<4x20xf32> to vector<4x8xf32>
    %c8_150 = arith.constant 8 : index
    %c8_151 = arith.constant 8 : index
    %202 = vector.load %arg4[%c8_150, %c8_151] : memref<96x28xf32, #tpu.memory_space<vmem>>, vector<4x8xf32>
    tpu.vector_store %arg4[%c8_150, %c8_151], %201 {strides = array<i32>} : memref<96x28xf32, #tpu.memory_space<vmem>>, vector<4x8xf32>,
    %203 = vector.extract_strided_slice %194 {offsets = [0, 2], sizes = [4, 8], strides = [1, 1]} : vector<4x20xf32> to vector<4x8xf32>
    %c16_152 = arith.constant 16 : index
    %c0_153 = arith.constant 0 : index
    %204 = vector.load %arg4[%c16_152, %c0_153] : memref<96x28xf32, #tpu.memory_space<vmem>>, vector<4x8xf32>
    tpu.vector_store %arg4[%c16_152, %c0_153], %203 {strides = array<i32>} : memref<96x28xf32, #tpu.memory_space<vmem>>, vector<4x8xf32>,
    %205 = vector.extract_strided_slice %194 {offsets = [0, 12], sizes = [4, 8], strides = [1, 1]} : vector<4x20xf32> to vector<4x8xf32>
    %c16_154 = arith.constant 16 : index
    %c8_155 = arith.constant 8 : index
    %206 = vector.load %arg4[%c16_154, %c8_155] : memref<96x28xf32, #tpu.memory_space<vmem>>, vector<4x8xf32>
    tpu.vector_store %arg4[%c16_154, %c8_155], %205 {strides = array<i32>} : memref<96x28xf32, #tpu.memory_space<vmem>>, vector<4x8xf32>,
    %c528 = arith.constant 528 : index
    %c0_156 = arith.constant 0 : index
    %207 = vector.load %arg2[%c528, %c0_156] : memref<640x150xf32, #tpu.memory_space<vmem>>, vector<16x24xf32>
    %c544 = arith.constant 544 : index
    %c0_157 = arith.constant 0 : index
    %208 = vector.load %arg2[%c544, %c0_157] : memref<640x150xf32, #tpu.memory_space<vmem>>, vector<16x1xf32>
    %c0_158 = arith.constant 0 : index
    %c0_159 = arith.constant 0 : index
    %209 = vector.load %arg4[%c0_158, %c0_159] : memref<96x28xf32, #tpu.memory_space<vmem>>, vector<24x16xf32>
    %cst_160 = arith.constant dense<0.000000e+00> : vector<16x16xf32>
    %210 = tpu.matmul %207, %209, %cst_160 {dimension_numbers = #tpu.dot_dimension_numbers<[1], [0], [0], [1], [0, 0, 1, 1], [], []>} : vector<16x24xf32>, vector<24x16xf32>, vector<16x16xf32> -> vector<16x16xf32>
    %211 = vector.broadcast %208 : vector<16x1xf32> to vector<16x16xf32>
    %212 = arith.addf %210, %211 : vector<16x16xf32>
    %cst_161 = arith.constant 0.000000e+00 : f32
    %213 = vector.broadcast %cst_161 : f32 to vector<16x16xf32>
    %214 = arith.cmpf oge, %212, %213 : vector<16x16xf32>
    %cst_162 = arith.constant 0.00999999977 : f32
    %215 = vector.broadcast %cst_162 : f32 to vector<16x16xf32>
    %216 = arith.mulf %215, %212 : vector<16x16xf32>
    %217 = arith.select %214, %212, %216 : vector<16x16xi1>, vector<16x16xf32>
    %218 = vector.extract_strided_slice %217 {offsets = [0, 0], sizes = [16, 8], strides = [1, 1]} : vector<16x16xf32> to vector<16x8xf32>
    %c0_163 = arith.constant 0 : index
    %c2_164 = arith.constant 2 : index
    %219 = vector.load %arg4[%c0_163, %c2_164] : memref<96x28xf32, #tpu.memory_space<vmem>>, vector<16x8xf32>
    tpu.vector_store %arg4[%c0_163, %c2_164], %218 {strides = array<i32>} : memref<96x28xf32, #tpu.memory_space<vmem>>, vector<16x8xf32>,
    %cst_165 = arith.constant 0.000000e+00 : f32
    %220 = vector.broadcast %cst_165 : f32 to vector<16x2xf32>
    %c0_166 = arith.constant 0 : index
    %c0_167 = arith.constant 0 : index
    %221 = vector.load %arg4[%c0_166, %c0_167] : memref<96x28xf32, #tpu.memory_space<vmem>>, vector<16x2xf32>
    tpu.vector_store %arg4[%c0_166, %c0_167], %220 {strides = array<i32>} : memref<96x28xf32, #tpu.memory_space<vmem>>, vector<16x2xf32>,
    %222 = vector.extract_strided_slice %217 {offsets = [0, 8], sizes = [16, 8], strides = [1, 1]} : vector<16x16xf32> to vector<16x8xf32>
    %c0_168 = arith.constant 0 : index
    %c12_169 = arith.constant 12 : index
    %223 = vector.load %arg4[%c0_168, %c12_169] : memref<96x28xf32, #tpu.memory_space<vmem>>, vector<16x8xf32>
    tpu.vector_store %arg4[%c0_168, %c12_169], %222 {strides = array<i32>} : memref<96x28xf32, #tpu.memory_space<vmem>>, vector<16x8xf32>,
    %cst_170 = arith.constant 0.000000e+00 : f32
    %224 = vector.broadcast %cst_170 : f32 to vector<16x2xf32>
    %c0_171 = arith.constant 0 : index
    %c10_172 = arith.constant 10 : index
    %225 = vector.load %arg4[%c0_171, %c10_172] : memref<96x28xf32, #tpu.memory_space<vmem>>, vector<16x2xf32>
    tpu.vector_store %arg4[%c0_171, %c10_172], %224 {strides = array<i32>} : memref<96x28xf32, #tpu.memory_space<vmem>>, vector<16x2xf32>,
    %226 = vector.extract_strided_slice %217 {offsets = [0, 0], sizes = [16, 8], strides = [1, 1]} : vector<16x16xf32> to vector<16x8xf32>
    %c16_173 = arith.constant 16 : index
    %c1_174 = arith.constant 1 : index
    %227 = vector.load %arg4[%c16_173, %c1_174] : memref<96x28xf32, #tpu.memory_space<vmem>>, vector<16x8xf32>
    tpu.vector_store %arg4[%c16_173, %c1_174], %226 {strides = array<i32>} : memref<96x28xf32, #tpu.memory_space<vmem>>, vector<16x8xf32>,
    %cst_175 = arith.constant 0.000000e+00 : f32
    %228 = vector.broadcast %cst_175 : f32 to vector<16x1xf32>
    %c16_176 = arith.constant 16 : index
    %c0_177 = arith.constant 0 : index
    %229 = vector.load %arg4[%c16_176, %c0_177] : memref<96x28xf32, #tpu.memory_space<vmem>>, vector<16x1xf32>
    tpu.vector_store %arg4[%c16_176, %c0_177], %228 {strides = array<i32>} : memref<96x28xf32, #tpu.memory_space<vmem>>, vector<16x1xf32>,
    %cst_178 = arith.constant 0.000000e+00 : f32
    %230 = vector.broadcast %cst_178 : f32 to vector<16x1xf32>
    %c16_179 = arith.constant 16 : index
    %c9_180 = arith.constant 9 : index
    %231 = vector.load %arg4[%c16_179, %c9_180] : memref<96x28xf32, #tpu.memory_space<vmem>>, vector<16x1xf32>
    tpu.vector_store %arg4[%c16_179, %c9_180], %230 {strides = array<i32>} : memref<96x28xf32, #tpu.memory_space<vmem>>, vector<16x1xf32>,
    %232 = vector.extract_strided_slice %217 {offsets = [0, 8], sizes = [16, 8], strides = [1, 1]} : vector<16x16xf32> to vector<16x8xf32>
    %c16_181 = arith.constant 16 : index
    %c11_182 = arith.constant 11 : index
    %233 = vector.load %arg4[%c16_181, %c11_182] : memref<96x28xf32, #tpu.memory_space<vmem>>, vector<16x8xf32>
    tpu.vector_store %arg4[%c16_181, %c11_182], %232 {strides = array<i32>} : memref<96x28xf32, #tpu.memory_space<vmem>>, vector<16x8xf32>,
    %cst_183 = arith.constant 0.000000e+00 : f32
    %234 = vector.broadcast %cst_183 : f32 to vector<16x1xf32>
    %c16_184 = arith.constant 16 : index
    %c10_185 = arith.constant 10 : index
    %235 = vector.load %arg4[%c16_184, %c10_185] : memref<96x28xf32, #tpu.memory_space<vmem>>, vector<16x1xf32>
    tpu.vector_store %arg4[%c16_184, %c10_185], %234 {strides = array<i32>} : memref<96x28xf32, #tpu.memory_space<vmem>>, vector<16x1xf32>,
    %cst_186 = arith.constant 0.000000e+00 : f32
    %236 = vector.broadcast %cst_186 : f32 to vector<16x1xf32>
    %c16_187 = arith.constant 16 : index
    %c19_188 = arith.constant 19 : index
    %237 = vector.load %arg4[%c16_187, %c19_188] : memref<96x28xf32, #tpu.memory_space<vmem>>, vector<16x1xf32>
    tpu.vector_store %arg4[%c16_187, %c19_188], %236 {strides = array<i32>} : memref<96x28xf32, #tpu.memory_space<vmem>>, vector<16x1xf32>,
    %238 = vector.extract_strided_slice %217 {offsets = [0, 0], sizes = [16, 8], strides = [1, 1]} : vector<16x16xf32> to vector<16x8xf32>
    %c32_189 = arith.constant 32 : index
    %c0_190 = arith.constant 0 : index
    %239 = vector.load %arg4[%c32_189, %c0_190] : memref<96x28xf32, #tpu.memory_space<vmem>>, vector<16x8xf32>
    tpu.vector_store %arg4[%c32_189, %c0_190], %238 {strides = array<i32>} : memref<96x28xf32, #tpu.memory_space<vmem>>, vector<16x8xf32>,
    %cst_191 = arith.constant 0.000000e+00 : f32
    %240 = vector.broadcast %cst_191 : f32 to vector<16x2xf32>
    %c32_192 = arith.constant 32 : index
    %c8_193 = arith.constant 8 : index
    %241 = vector.load %arg4[%c32_192, %c8_193] : memref<96x28xf32, #tpu.memory_space<vmem>>, vector<16x2xf32>
    tpu.vector_store %arg4[%c32_192, %c8_193], %240 {strides = array<i32>} : memref<96x28xf32, #tpu.memory_space<vmem>>, vector<16x2xf32>,
    %242 = vector.extract_strided_slice %217 {offsets = [0, 8], sizes = [16, 8], strides = [1, 1]} : vector<16x16xf32> to vector<16x8xf32>
    %c32_194 = arith.constant 32 : index
    %c10_195 = arith.constant 10 : index
    %243 = vector.load %arg4[%c32_194, %c10_195] : memref<96x28xf32, #tpu.memory_space<vmem>>, vector<16x8xf32>
    tpu.vector_store %arg4[%c32_194, %c10_195], %242 {strides = array<i32>} : memref<96x28xf32, #tpu.memory_space<vmem>>, vector<16x8xf32>,
    %cst_196 = arith.constant 0.000000e+00 : f32
    %244 = vector.broadcast %cst_196 : f32 to vector<16x2xf32>
    %c32_197 = arith.constant 32 : index
    %c18_198 = arith.constant 18 : index
    %245 = vector.load %arg4[%c32_197, %c18_198] : memref<96x28xf32, #tpu.memory_space<vmem>>, vector<16x2xf32>
    tpu.vector_store %arg4[%c32_197, %c18_198], %244 {strides = array<i32>} : memref<96x28xf32, #tpu.memory_space<vmem>>, vector<16x2xf32>,
    %c560 = arith.constant 560 : index
    %c0_199 = arith.constant 0 : index
    %246 = vector.load %arg2[%c560, %c0_199] : memref<640x150xf32, #tpu.memory_space<vmem>>, vector<32x48xf32>
    %c592 = arith.constant 592 : index
    %c0_200 = arith.constant 0 : index
    %247 = vector.load %arg2[%c592, %c0_200] : memref<640x150xf32, #tpu.memory_space<vmem>>, vector<32x1xf32>
    %c0_201 = arith.constant 0 : index
    %c0_202 = arith.constant 0 : index
    %248 = vector.load %arg4[%c0_201, %c0_202] : memref<96x28xf32, #tpu.memory_space<vmem>>, vector<48x20xf32>
    %cst_203 = arith.constant dense<0.000000e+00> : vector<32x20xf32>
    %249 = tpu.matmul %246, %248, %cst_203 {dimension_numbers = #tpu.dot_dimension_numbers<[1], [0], [0], [1], [0, 0, 1, 1], [], []>} : vector<32x48xf32>, vector<48x20xf32>, vector<32x20xf32> -> vector<32x20xf32>
    %250 = vector.broadcast %247 : vector<32x1xf32> to vector<32x20xf32>
    %251 = arith.addf %249, %250 : vector<32x20xf32>
    %cst_204 = arith.constant 0.000000e+00 : f32
    %252 = vector.broadcast %cst_204 : f32 to vector<32x20xf32>
    %253 = arith.cmpf oge, %251, %252 : vector<32x20xf32>
    %cst_205 = arith.constant 0.00999999977 : f32
    %254 = vector.broadcast %cst_205 : f32 to vector<32x20xf32>
    %255 = arith.mulf %254, %251 : vector<32x20xf32>
    %256 = arith.select %253, %251, %255 : vector<32x20xi1>, vector<32x20xf32>
    %257 = vector.extract_strided_slice %256 {offsets = [0, 0], sizes = [32, 10], strides = [1, 1]} : vector<32x20xf32> to vector<32x10xf32>
    %c0_206 = arith.constant 0 : index
    %c2_207 = arith.constant 2 : index
    %258 = vector.load %arg4[%c0_206, %c2_207] : memref<96x28xf32, #tpu.memory_space<vmem>>, vector<32x10xf32>
    tpu.vector_store %arg4[%c0_206, %c2_207], %257 {strides = array<i32>} : memref<96x28xf32, #tpu.memory_space<vmem>>, vector<32x10xf32>,
    %cst_208 = arith.constant 0.000000e+00 : f32
    %259 = vector.broadcast %cst_208 : f32 to vector<32x2xf32>
    %c0_209 = arith.constant 0 : index
    %c0_210 = arith.constant 0 : index
    %260 = vector.load %arg4[%c0_209, %c0_210] : memref<96x28xf32, #tpu.memory_space<vmem>>, vector<32x2xf32>
    tpu.vector_store %arg4[%c0_209, %c0_210], %259 {strides = array<i32>} : memref<96x28xf32, #tpu.memory_space<vmem>>, vector<32x2xf32>,
    %261 = vector.extract_strided_slice %256 {offsets = [0, 10], sizes = [32, 10], strides = [1, 1]} : vector<32x20xf32> to vector<32x10xf32>
    %c0_211 = arith.constant 0 : index
    %c14_212 = arith.constant 14 : index
    %262 = vector.load %arg4[%c0_211, %c14_212] : memref<96x28xf32, #tpu.memory_space<vmem>>, vector<32x10xf32>
    tpu.vector_store %arg4[%c0_211, %c14_212], %261 {strides = array<i32>} : memref<96x28xf32, #tpu.memory_space<vmem>>, vector<32x10xf32>,
    %cst_213 = arith.constant 0.000000e+00 : f32
    %263 = vector.broadcast %cst_213 : f32 to vector<32x2xf32>
    %c0_214 = arith.constant 0 : index
    %c12_215 = arith.constant 12 : index
    %264 = vector.load %arg4[%c0_214, %c12_215] : memref<96x28xf32, #tpu.memory_space<vmem>>, vector<32x2xf32>
    tpu.vector_store %arg4[%c0_214, %c12_215], %263 {strides = array<i32>} : memref<96x28xf32, #tpu.memory_space<vmem>>, vector<32x2xf32>,
    %265 = vector.extract_strided_slice %256 {offsets = [0, 0], sizes = [32, 10], strides = [1, 1]} : vector<32x20xf32> to vector<32x10xf32>
    %c32_216 = arith.constant 32 : index
    %c1_217 = arith.constant 1 : index
    %266 = vector.load %arg4[%c32_216, %c1_217] : memref<96x28xf32, #tpu.memory_space<vmem>>, vector<32x10xf32>
    tpu.vector_store %arg4[%c32_216, %c1_217], %265 {strides = array<i32>} : memref<96x28xf32, #tpu.memory_space<vmem>>, vector<32x10xf32>,
    %cst_218 = arith.constant 0.000000e+00 : f32
    %267 = vector.broadcast %cst_218 : f32 to vector<32x1xf32>
    %c32_219 = arith.constant 32 : index
    %c0_220 = arith.constant 0 : index
    %268 = vector.load %arg4[%c32_219, %c0_220] : memref<96x28xf32, #tpu.memory_space<vmem>>, vector<32x1xf32>
    tpu.vector_store %arg4[%c32_219, %c0_220], %267 {strides = array<i32>} : memref<96x28xf32, #tpu.memory_space<vmem>>, vector<32x1xf32>,
    %cst_221 = arith.constant 0.000000e+00 : f32
    %269 = vector.broadcast %cst_221 : f32 to vector<32x1xf32>
    %c32_222 = arith.constant 32 : index
    %c11_223 = arith.constant 11 : index
    %270 = vector.load %arg4[%c32_222, %c11_223] : memref<96x28xf32, #tpu.memory_space<vmem>>, vector<32x1xf32>
    tpu.vector_store %arg4[%c32_222, %c11_223], %269 {strides = array<i32>} : memref<96x28xf32, #tpu.memory_space<vmem>>, vector<32x1xf32>,
    %271 = vector.extract_strided_slice %256 {offsets = [0, 10], sizes = [32, 10], strides = [1, 1]} : vector<32x20xf32> to vector<32x10xf32>
    %c32_224 = arith.constant 32 : index
    %c13 = arith.constant 13 : index
    %272 = vector.load %arg4[%c32_224, %c13] : memref<96x28xf32, #tpu.memory_space<vmem>>, vector<32x10xf32>
    tpu.vector_store %arg4[%c32_224, %c13], %271 {strides = array<i32>} : memref<96x28xf32, #tpu.memory_space<vmem>>, vector<32x10xf32>,
    %cst_225 = arith.constant 0.000000e+00 : f32
    %273 = vector.broadcast %cst_225 : f32 to vector<32x1xf32>
    %c32_226 = arith.constant 32 : index
    %c12_227 = arith.constant 12 : index
    %274 = vector.load %arg4[%c32_226, %c12_227] : memref<96x28xf32, #tpu.memory_space<vmem>>, vector<32x1xf32>
    tpu.vector_store %arg4[%c32_226, %c12_227], %273 {strides = array<i32>} : memref<96x28xf32, #tpu.memory_space<vmem>>, vector<32x1xf32>,
    %cst_228 = arith.constant 0.000000e+00 : f32
    %275 = vector.broadcast %cst_228 : f32 to vector<32x1xf32>
    %c32_229 = arith.constant 32 : index
    %c23 = arith.constant 23 : index
    %276 = vector.load %arg4[%c32_229, %c23] : memref<96x28xf32, #tpu.memory_space<vmem>>, vector<32x1xf32>
    tpu.vector_store %arg4[%c32_229, %c23], %275 {strides = array<i32>} : memref<96x28xf32, #tpu.memory_space<vmem>>, vector<32x1xf32>,
    %277 = vector.extract_strided_slice %256 {offsets = [0, 0], sizes = [32, 10], strides = [1, 1]} : vector<32x20xf32> to vector<32x10xf32>
    %c64_230 = arith.constant 64 : index
    %c0_231 = arith.constant 0 : index
    %278 = vector.load %arg4[%c64_230, %c0_231] : memref<96x28xf32, #tpu.memory_space<vmem>>, vector<32x10xf32>
    tpu.vector_store %arg4[%c64_230, %c0_231], %277 {strides = array<i32>} : memref<96x28xf32, #tpu.memory_space<vmem>>, vector<32x10xf32>,
    %cst_232 = arith.constant 0.000000e+00 : f32
    %279 = vector.broadcast %cst_232 : f32 to vector<32x2xf32>
    %c64_233 = arith.constant 64 : index
    %c10_234 = arith.constant 10 : index
    %280 = vector.load %arg4[%c64_233, %c10_234] : memref<96x28xf32, #tpu.memory_space<vmem>>, vector<32x2xf32>
    tpu.vector_store %arg4[%c64_233, %c10_234], %279 {strides = array<i32>} : memref<96x28xf32, #tpu.memory_space<vmem>>, vector<32x2xf32>,
    %281 = vector.extract_strided_slice %256 {offsets = [0, 10], sizes = [32, 10], strides = [1, 1]} : vector<32x20xf32> to vector<32x10xf32>
    %c64_235 = arith.constant 64 : index
    %c12_236 = arith.constant 12 : index
    %282 = vector.load %arg4[%c64_235, %c12_236] : memref<96x28xf32, #tpu.memory_space<vmem>>, vector<32x10xf32>
    tpu.vector_store %arg4[%c64_235, %c12_236], %281 {strides = array<i32>} : memref<96x28xf32, #tpu.memory_space<vmem>>, vector<32x10xf32>,
    %cst_237 = arith.constant 0.000000e+00 : f32
    %283 = vector.broadcast %cst_237 : f32 to vector<32x2xf32>
    %c64_238 = arith.constant 64 : index
    %c22 = arith.constant 22 : index
    %284 = vector.load %arg4[%c64_238, %c22] : memref<96x28xf32, #tpu.memory_space<vmem>>, vector<32x2xf32>
    tpu.vector_store %arg4[%c64_238, %c22], %283 {strides = array<i32>} : memref<96x28xf32, #tpu.memory_space<vmem>>, vector<32x2xf32>,
    %c624 = arith.constant 624 : index
    %c0_239 = arith.constant 0 : index
    %285 = vector.load %arg2[%c624, %c0_239] : memref<640x150xf32, #tpu.memory_space<vmem>>, vector<4x96xf32>
    %c632 = arith.constant 632 : index
    %c0_240 = arith.constant 0 : index
    %286 = vector.load %arg2[%c632, %c0_240] : memref<640x150xf32, #tpu.memory_space<vmem>>, vector<4x1xf32>
    %c0_241 = arith.constant 0 : index
    %c0_242 = arith.constant 0 : index
    %287 = vector.load %arg4[%c0_241, %c0_242] : memref<96x28xf32, #tpu.memory_space<vmem>>, vector<96x24xf32>
    %cst_243 = arith.constant dense<0.000000e+00> : vector<4x24xf32>
    %288 = tpu.matmul %285, %287, %cst_243 {dimension_numbers = #tpu.dot_dimension_numbers<[1], [0], [0], [1], [0, 0, 1, 1], [], []>} : vector<4x96xf32>, vector<96x24xf32>, vector<4x24xf32> -> vector<4x24xf32>
    %289 = vector.broadcast %286 : vector<4x1xf32> to vector<4x24xf32>
    %290 = arith.addf %288, %289 : vector<4x24xf32>
    %c0_244 = arith.constant 0 : index
    %c0_245 = arith.constant 0 : index
    %291 = vector.load %arg3[%c0_244, %c0_245] : memref<4x24xf32, #tpu.memory_space<vmem>>, vector<4x24xf32>
    tpu.vector_store %arg3[%c0_244, %c0_245], %290 {strides = array<i32>} : memref<4x24xf32, #tpu.memory_space<vmem>>, vector<4x24xf32>,
    return
  }
  func.func @transform_0(%arg0: i32) -> (i32, i32) {
    %c0_i32 = arith.constant 0 : i32
    %c0_i32_0 = arith.constant 0 : i32
    return %c0_i32, %arg0 : i32, i32
  }
  func.func @transform_1(%arg0: i32) -> (i32, i32) {
    %c0_i32 = arith.constant 0 : i32
    %c0_i32_0 = arith.constant 0 : i32
    %c0_i32_1 = arith.constant 0 : i32
    return %c0_i32, %c0_i32_0 : i32, i32
  }
  func.func @transform_2(%arg0: i32) -> (i32, i32) {
    %c0_i32 = arith.constant 0 : i32
    %c0_i32_0 = arith.constant 0 : i32
    return %c0_i32, %arg0 : i32, i32
  }
}

</mosaic_0001>

<bundles_post_ra>
// kernel: tpu_custom_call.1
= control target key start
LH: loop header
LB: loop body
LE: loop exit
PB: predicated region body
PF: predicated region fallthrough
CT: control target
= control target key end

     0   :  { %vm30_vm0 = vcmask 109568   ;;  %s2154_s11 = smov 126   ;;  %s2155_s12 = smov 127   ;;  %vm16_vm1 = vcmask 228352   ;;  %s2813_s0 = inlined_call_operand.vmem [shape: f32[4,32], index: 0, kind: input, shape index: {}]   ;;  %s2814_s1 = inlined_call_operand.vmem [shape: f32[640,150], index: 1, kind: input, shape index: {}]   ;;  %s2815_s2 = inlined_call_operand.hbm [shape: f32[4,24], index: 2, kind: output, shape index: {}]  }
   0x1   :  { %v29_v0 = vld [vmem:[%s2813_s0] sm:$0xf] }
   0x2   :  { %33 = vrot.lane.b32.xlu0 %v29_v0, %s2154_s11  ;;  %38 = vrot.lane.b32.xlu1 %v29_v0, %s2155_s12 }
   0x3   :  { %7 = vsyncpa [#allocation5], 0  ;;  %v2156_v1 = vmov 0.0   ;;  %v51_v2 = vld [vmem:[%s2814_s1] sm:$0xff]  ;;  %vm82_vm2 = vcmask 195584   ;;  %s2157_s14 = smov 124  }
   0x4   :  { %17 = vst.msk [vmem:[#allocation2] sm:$0xff] %vm16_vm1, %v2156_v1  ;;  %19 = vst.msk [vmem:[#allocation2 + $0x10] sm:$0xff] %vm16_vm1, %v2156_v1  ;;  %s2158_s15 = smov 125   ;;  %1984 = vmatprep.mubr.msk.f32.mxu0 %vm82_vm2, %v51_v2  ;;  %v57_v3 = vld [vmem:[%s2814_s1 + $0x60] sm:$0xff]  ;;  %v58_v4 = vld [vmem:[%s2814_s1 + $0x70] sm:$0xff]  ;;  %v2159_v5 = vmov 0  }
   0x5   :  { %18 = vst.msk [vmem:[#allocation2 + $0x8] sm:$0xff] %vm16_vm1, %v2156_v1  ;;  %20 = vst.msk [vmem:[#allocation2 + $0x18] sm:$0xff] %vm16_vm1, %v2156_v1  ;;  %2131 = vset.pattern.permute.xlu1 %v2159_v5  ;;  %2130 = vset.pattern.permute.xlu0 %v2159_v5  ;;  %v56_v6 = vld [vmem:[%s2814_s1 + $0x50] sm:$0xff]  ;;  %v55_v7 = vld [vmem:[%s2814_s1 + $0x40] sm:$0xff]  ;;  %vm36_vm3 = vcmask 224368   ;;  %vm192_vm5 = vcmask 97280  }
   0x6   :  { %21 = vst.msk [vmem:[#allocation2 + $0x20] sm:$0xff] %vm16_vm1, %v2156_v1  ;;  %22 = vst.msk [vmem:[#allocation2 + $0x28] sm:$0xff] %vm16_vm1, %v2156_v1  ;;  %47 = vrot.lane.b32.xlu0 %v29_v0, %s2157_s14  ;;  %42 = vrot.lane.b32.xlu1 %v29_v0, %s2158_s15  ;;  %v52_v15 = vld [vmem:[%s2814_s1 + $0x10] sm:$0xff]  ;;  %v53_v16 = vld [vmem:[%s2814_s1 + $0x20] sm:$0xff]  ;;  %vm2816_vm9 = vcmask 785408   ;;  %vm213_vm10 = vcmask 195680  }
   0x7   :  { %23 = vst.msk [vmem:[#allocation2 + $0x30] sm:$0xff] %vm16_vm1, %v2156_v1  ;;  %24 = vst.msk [vmem:[#allocation2 + $0x38] sm:$0xff] %vm16_vm1, %v2156_v1  ;;  %v54_v17 = vld [vmem:[%s2814_s1 + $0x30] sm:$0xff]  ;;  %v272_v38 = vld [vmem:[%s2814_s1 + $0xa0] sm:$0xff]  ;;  %vm2817_vm12 = vcmask 80896   ;;  %vm2160_vm14 = vmmov 0  }
   0x8   :  { %25 = vst.msk [vmem:[#allocation2 + $0x40] sm:$0xff] %vm16_vm1, %v2156_v1  ;;  %26 = vst.msk [vmem:[#allocation2 + $0x48] sm:$0xff] %vm16_vm1, %v2156_v1  ;;  %v273_v39 = vld [vmem:[%s2814_s1 + $0xb0] sm:$0xff]  ;;  %v270_v40 = vld [vmem:[%s2814_s1 + $0x80] sm:$0xff]  ;;  %vm395_vm15 = vcmask 162896   ;;  %s2161_s23 = smov 120  }
   0x9   :  { %27 = vst.msk [vmem:[#allocation2 + $0x50] sm:$0xff] %vm16_vm1, %v2156_v1  ;;  %28 = vst.msk [vmem:[#allocation2 + $0x58] sm:$0xff] %vm16_vm1, %v2156_v1  ;;  %2014 = vmatprep.mubr.msk.f32.mxu1 %vm2816_vm9, %v270_v40  ;;  %s2162_s22 = smov 10   ;;  %s2164_s24 = smov 2  }
   0xa   :  { %31 = vst.msk [vmem:[#allocation2] sm:$0xf] %vm30_vm0, %v29_v0  ;;  %74 = vperm.xlu1 %2131, %v57_v3   ;;  %79 = vperm.xlu0 %2130, %v58_v4   ;;  %s2165_s25 = smov 11   ;;  %s2166_s28 = smov 12  }
   0xb   :  { %s2168_s10 = smov 4   ;;  %s2169_s4 = smov [#allocation4]  }
   0xc   :  { %s1871_s5 = sshll.u32 %s2169_s4, 4  ;;  %s1872_s5 = int_to_ptr.vmem [resolvable:$true] %s1871_s5 }
   0xd   :  { %s2132_s6 = scalar_lea.vmem %s1872_s5, 64  ;;  %p2137_p1 = scmp.lt.s32.totalorder %s1872_s5, %s1872_s5 }
   0xe   :  { %69 = vperm.xlu1 %2131, %v56_v6   ;;  %64 = vperm.xlu0 %2130, %v55_v7   ;;  %v271_v6 = vld [vmem:[%s2814_s1 + $0x90] sm:$0xff]  ;;  %p2133_p0 = scmp.ne.s32.totalorder %s1872_s5, %s2132_s6  ;;  %p2138_p2 = scmp.lt.s32.totalorder %s2132_s6, %s2132_s6 }
  0x10   :  { %p2139_p3 = por %p2138_p2, %p2137_p1 }
  0x12   :  { %p2140_p4 = pnand %p2139_p3, %p2133_p0 }
  0x74   :  { %v34_v8 = vpop.permute.xlu0 %33  ;;  %v39_v9 = vpop.permute.xlu1 %38 }
  0x75   :  { %37 = vst.msk [vmem:[#allocation2] sm:$0xf] %vm36_vm3, %v34_v8 }
  0x76   :  { %46 = vst.msk [vmem:[#allocation2 + $0x10] sm:$0xf] %vm30_vm0, %v34_v8  ;;  %41 = vst.msk [vmem:[#allocation2 + $0x8] sm:$0xf] %vm30_vm0, %v39_v9  ;;  %vm437_vm0 = vcmask 392192  }
  0x78   :  { %v48_v10 = vpop.permute.xlu0 %47  ;;  %v43_v11 = vpop.permute.xlu1 %42 }
  0x79   :  { %50 = vst.msk [vmem:[#allocation2 + $0x10] sm:$0xf] %vm36_vm3, %v48_v10  ;;  %45 = vst.msk [vmem:[#allocation2 + $0x8] sm:$0xf] %vm36_vm3, %v43_v11  ;;  %vm514_vm3 = vcmask 60416  }
  0x7c   :  { %v59_v14 = vld [vmem:[#allocation2] sm:$0xff] }
  0x80   :  { %v61_v12 = vld [vmem:[#allocation2 + $0x10] sm:$0xff]  ;;  %v60_v13 = vld [vmem:[#allocation2 + $0x8] sm:$0xff] }
  0x81   :  { %1978 = vmatprep.subr.mxu0 %v61_v12 }
  0x82   :  { %1979 = vmatpush3.msra.mxu0 %v61_v12 }
  0x83   :  { %1980 = vmatprep.subr.mxu0 %v60_v13 }
  0x84   :  { %1981 = vmatpush3.msra.mxu0 %v60_v13 }
  0x85   :  { %1982 = vmatprep.subr.mxu0 %v59_v14  ;;  %v75_v18 = vpop.permute.xlu1 %74  ;;  %v80_v19 = vpop.permute.xlu0 %79 }
  0x86   :  { %1983 = vmatpush3.msra.mxu0 %v59_v14 }
  0x87   :  { %1985 = vmatmul.mubr.msk.f32.vlgmr.msra.gmra.mxu0 %vm82_vm2, %v52_v15  ;;  %2017 = vmatprep.subr.mxu0 %v2156_v1 }
  0x88   :  { %1987 = vmatprep.mubr.msk.f32.mxu0 %vm82_vm2, %v53_v16 }
  0x89   :  { %v70_v20 = vpop.permute.xlu1 %69  ;;  %v65_v23 = vpop.permute.xlu0 %64 }
  0x8b   :  { %1988 = vmatmul.mubr.msk.f32.gmra.mxu0 %vm82_vm2, %v54_v17  ;;  %v425_v17 = vld [vmem:[%s2814_s1 + $0xd0] sm:$0xf] }
  0x8c   :  { %2029 = vmatprep.mubr.msk.f32.mxu0 %vm2160_vm14, %v2156_v1 }
 0x147   :  { %v1986_v21 = vpop.f32.mrf.mxu0 }
 0x148   :  { %v167_v22 = vadd.f32 %v1986_v21, %v70_v20 }
 0x149   :  { %v161_v24 = vpop.f32.mrf.mxu0 }
 0x14a   :  { %vm181_vm4 = vcmp.ge.f32.partialorder %v167_v22, 0.0  ;;  %v185_v25 = vmul.f32 0.01, %v167_v22  ;;  %v162_v26 = vadd.f32 %v161_v24, %v65_v23 }
 0x14b   :  { %v1989_v27 = vpop.f32.mrf.mxu0 }
 0x14c   :  { %v189_v28 = vsel %vm181_vm4, %v167_v22, %v185_v25  ;;  %vm180_vm6 = vcmp.ge.f32.partialorder %v162_v26, 0.0  ;;  %v184_v29 = vmul.f32 0.01, %v162_v26  ;;  %v177_v30 = vadd.f32 %v1989_v27, %v80_v19 }
 0x14d   :  { %256 = vrot.lane.b32.xlu0 %v189_v28, %s2157_s14  ;;  %203 = vrot.lane.b32.xlu1 %v189_v28, %s2154_s11  ;;  %v171_v31 = vpop.f32.mrf.mxu0  ;;  %194 = vst.msk [vmem:[#allocation2 + $0x8] sm:$0xff] %vm192_vm5, %v189_v28  ;;  %vm520_vm4 = vcmask 126016  }
 0x14e   :  { %v188_v32 = vsel %vm180_vm6, %v162_v26, %v184_v29  ;;  %vm183_vm7 = vcmp.ge.f32.partialorder %v177_v30, 0.0  ;;  %v187_v33 = vmul.f32 0.01, %v177_v30  ;;  %v172_v34 = vadd.f32 %v171_v31, %v75_v18  ;;  %v424_v31 = vld [vmem:[%s2814_s1 + $0xc0] sm:$0xf] }
 0x14f   :  { %193 = vst.msk [vmem:[#allocation2] sm:$0xff] %vm192_vm5, %v188_v32  ;;  %vm621_vm6 = vcmask 57344  }
 0x150   :  { %v191_v35 = vsel %vm183_vm7, %v177_v30, %v187_v33  ;;  %vm182_vm8 = vcmp.ge.f32.partialorder %v172_v34, 0.0  ;;  %v186_v36 = vmul.f32 0.01, %v172_v34  ;;  %vm631_vm7 = vcmask 64512  }
 0x151   :  { %254 = vrot.lane.b32.xlu0 %v188_v32, %s2157_s14  ;;  %201 = vrot.lane.b32.xlu1 %v188_v32, %s2154_s11  ;;  %196 = vst.msk [vmem:[#allocation2 + $0x18] sm:$0xff] %vm192_vm5, %v191_v35 }
 0x152   :  { %v190_v37 = vsel %vm182_vm8, %v172_v34, %v186_v36  ;;  %vm727_vm8 = vcmask 1043456  }
 0x153   :  { %195 = vst.msk [vmem:[#allocation2 + $0x10] sm:$0xff] %vm192_vm5, %v190_v37 }
 0x155   :  { %260 = vrot.lane.b32.xlu0 %v191_v35, %s2157_s14  ;;  %207 = vrot.lane.b32.xlu1 %v191_v35, %s2154_s11 }
 0x159   :  { %240 = vrot.lane.b32.xlu0 %v191_v35, %s2158_s15  ;;  %224 = vrot.lane.b32.xlu1 %v191_v35, %s2155_s12 }
 0x15d   :  { %258 = vrot.lane.b32.xlu0 %v190_v37, %s2157_s14  ;;  %205 = vrot.lane.b32.xlu1 %v190_v37, %s2154_s11 }
 0x161   :  { %236 = vrot.lane.b32.xlu0 %v189_v28, %s2158_s15  ;;  %220 = vrot.lane.b32.xlu1 %v189_v28, %s2155_s12 }
 0x165   :  { %238 = vrot.lane.b32.xlu0 %v190_v37, %s2158_s15  ;;  %222 = vrot.lane.b32.xlu1 %v190_v37, %s2155_s12 }
 0x169   :  { %234 = vrot.lane.b32.xlu0 %v188_v32, %s2158_s15  ;;  %218 = vrot.lane.b32.xlu1 %v188_v32, %s2155_s12 }
 0x16d   :  { %288 = vperm.xlu0 %2130, %v272_v38   ;;  %293 = vperm.xlu1 %2131, %v273_v39   ;;  %v536_v39 = vld [vmem:[%s2814_s1 + $0xf0] ss:$0 sm:$0xff] }
 0x1bf   :  { %v257_v41 = vpop.permute.xlu0 %256  ;;  %v204_v42 = vpop.permute.xlu1 %203 }
 0x1c0   :  { %215 = vst.msk [vmem:[#allocation2 + $0x8] sm:$0xff] %vm213_vm10, %v204_v42 }
 0x1c1   :  { %251 = vst.msk [vmem:[#allocation2 + $0x48] sm:$0xff] %vm192_vm5, %v204_v42 }
 0x1c2   :  { %267 = vst.msk [vmem:[#allocation2 + $0x48] sm:$0xff] %vm213_vm10, %v257_v41 }
 0x1c3   :  { %v255_v43 = vpop.permute.xlu0 %254  ;;  %v202_v44 = vpop.permute.xlu1 %201 }
 0x1c4   :  { %214 = vst.msk [vmem:[#allocation2] sm:$0xff] %vm213_vm10, %v202_v44 }
 0x1c5   :  { %250 = vst.msk [vmem:[#allocation2 + $0x40] sm:$0xff] %vm192_vm5, %v202_v44 }
 0x1c6   :  { %266 = vst.msk [vmem:[#allocation2 + $0x40] sm:$0xff] %vm213_vm10, %v255_v43 }
 0x1c7   :  { %v261_v45 = vpop.permute.xlu0 %260  ;;  %v208_v46 = vpop.permute.xlu1 %207  ;;  %v275_v4 = vld [vmem:[#allocation2 + $0x8] sm:$0xff] }
 0x1c8   :  { %217 = vst.msk [vmem:[#allocation2 + $0x18] sm:$0xff] %vm213_vm10, %v208_v46 }
 0x1c9   :  { %253 = vst.msk [vmem:[#allocation2 + $0x58] sm:$0xff] %vm192_vm5, %v208_v46  ;;  %v283_v57 = vld [vmem:[#allocation2 + $0x48] sm:$0xff]  ;;  %v535_v46 = vld [vmem:[%s2814_s1 + $0xe0] ss:$0 sm:$0xff] }
 0x1ca   :  { %269 = vst.msk [vmem:[#allocation2 + $0x58] sm:$0xff] %vm213_vm10, %v261_v45 }
 0x1cb   :  { %v241_v47 = vpop.permute.xlu0 %240  ;;  %v225_v48 = vpop.permute.xlu1 %224  ;;  %v274_v5 = vld [vmem:[#allocation2] sm:$0xff] }
 0x1cc   :  { %233 = vst.msk [vmem:[#allocation2 + $0x38] sm:$0xff] %vm192_vm5, %v225_v48  ;;  %v629_v48 = vld [vmem:[%s2814_s1 + $0x100] sm:$0xff] }
 0x1cd   :  { %249 = vst.msk [vmem:[#allocation2 + $0x38] sm:$0xff] %vm213_vm10, %v241_v47  ;;  %v282_v60 = vld [vmem:[#allocation2 + $0x40] sm:$0xff] }
 0x1cf   :  { %v259_v49 = vpop.permute.xlu0 %258  ;;  %v206_v50 = vpop.permute.xlu1 %205  ;;  %v277_v2 = vld [vmem:[#allocation2 + $0x18] sm:$0xff] }
 0x1d0   :  { %216 = vst.msk [vmem:[#allocation2 + $0x10] sm:$0xff] %vm213_vm10, %v206_v50 }
 0x1d1   :  { %252 = vst.msk [vmem:[#allocation2 + $0x50] sm:$0xff] %vm192_vm5, %v206_v50  ;;  %v285_v51 = vld [vmem:[#allocation2 + $0x58] sm:$0xff] }
 0x1d2   :  { %268 = vst.msk [vmem:[#allocation2 + $0x50] sm:$0xff] %vm213_vm10, %v259_v49  ;;  %1990 = vmatprep.subr.mxu1 %v285_v51 }
 0x1d3   :  { %1991 = vmatpush3.msra.mxu1 %v285_v51  ;;  %v237_v52 = vpop.permute.xlu0 %236  ;;  %v221_v53 = vpop.permute.xlu1 %220 }
 0x1d4   :  { %231 = vst.msk [vmem:[#allocation2 + $0x28] sm:$0xff] %vm192_vm5, %v221_v53  ;;  %v281_v61 = vld [vmem:[#allocation2 + $0x38] sm:$0xff] }
 0x1d5   :  { %247 = vst.msk [vmem:[#allocation2 + $0x28] sm:$0xff] %vm213_vm10, %v237_v52 }
 0x1d7   :  { %v239_v54 = vpop.permute.xlu0 %238  ;;  %v223_v55 = vpop.permute.xlu1 %222  ;;  %v276_v3 = vld [vmem:[#allocation2 + $0x10] sm:$0xff] }
 0x1d8   :  { %232 = vst.msk [vmem:[#allocation2 + $0x30] sm:$0xff] %vm192_vm5, %v223_v55 }
 0x1d9   :  { %v284_v56 = vld [vmem:[#allocation2 + $0x50] sm:$0xff]  ;;  %248 = vst.msk [vmem:[#allocation2 + $0x30] sm:$0xff] %vm213_vm10, %v239_v54 }
 0x1da   :  { %1992 = vmatprep.subr.mxu1 %v284_v56 }
 0x1db   :  { %1993 = vmatpush3.msra.mxu1 %v284_v56  ;;  %v235_v58 = vpop.permute.xlu0 %234  ;;  %v219_v59 = vpop.permute.xlu1 %218 }
 0x1dc   :  { %1994 = vmatprep.subr.mxu1 %v283_v57  ;;  %230 = vst.msk [vmem:[#allocation2 + $0x20] sm:$0xff] %vm192_vm5, %v219_v59  ;;  %v279_v63 = vld [vmem:[#allocation2 + $0x28] sm:$0xff]  ;;  %v630_v59 = vld [vmem:[%s2814_s1 + $0x110] ss:$0 sm:$0xff] }
 0x1dd   :  { %1995 = vmatpush3.msra.mxu1 %v283_v57  ;;  %246 = vst.msk [vmem:[#allocation2 + $0x20] sm:$0xff] %vm213_vm10, %v235_v58  ;;  %v709_v57 = vld [vmem:[%s2814_s1 + $0x128] sm:$0xf]  ;;  %v708_v58 = vld [vmem:[%s2814_s1 + $0x120] sm:$0xf] }
 0x1de   :  { %1996 = vmatprep.subr.mxu1 %v282_v60 }
 0x1df   :  { %1997 = vmatpush3.msra.mxu1 %v282_v60 }
 0x1e0   :  { %1998 = vmatprep.subr.mxu1 %v281_v61  ;;  %v280_v62 = vld [vmem:[#allocation2 + $0x30] sm:$0xff] }
 0x1e1   :  { %1999 = vmatpush3.msra.mxu1 %v281_v61 }
 0x1e2   :  { %2000 = vmatprep.subr.mxu1 %v280_v62 }
 0x1e3   :  { %2001 = vmatpush3.msra.mxu1 %v280_v62 }
 0x1e4   :  { %2002 = vmatprep.subr.mxu1 %v279_v63  ;;  %v278_v0 = vld [vmem:[#allocation2 + $0x20] sm:$0xff] }
 0x1e5   :  { %2003 = vmatpush3.msra.mxu1 %v279_v63 }
 0x1e6   :  { %2004 = vmatprep.subr.mxu1 %v278_v0 }
 0x1e7   :  { %2005 = vmatpush3.msra.mxu1 %v278_v0  ;;  %v826_v0 = vld [vmem:[%s2814_s1 + $0x230] sm:$0xff] }
 0x1e8   :  { %2006 = vmatprep.subr.mxu1 %v277_v2  ;;  %v294_v7 = vpop.permute.xlu1 %293  ;;  %v289_v10 = vpop.permute.xlu0 %288 }
 0x1e9   :  { %2007 = vmatpush3.msra.mxu1 %v277_v2 }
 0x1ea   :  { %2008 = vmatprep.subr.mxu1 %v276_v3 }
 0x1eb   :  { %2009 = vmatpush3.msra.mxu1 %v276_v3  ;;  %v825_v3 = vld [vmem:[%s2814_s1 + $0x220] sm:$0xff] }
 0x1ec   :  { %2010 = vmatprep.subr.mxu1 %v275_v4 }
 0x1ed   :  { %2011 = vmatpush3.msra.mxu1 %v275_v4  ;;  %v824_v4 = vld [vmem:[%s2814_s1 + $0x210] sm:$0xff] }
 0x1ee   :  { %2012 = vmatprep.subr.mxu1 %v274_v5 }
 0x1ef   :  { %2013 = vmatpush3.msra.mxu1 %v274_v5  ;;  %v823_v5 = vld [vmem:[%s2814_s1 + $0x200] sm:$0xff] }
 0x1f0   :  { %2015 = vmatmul.mubr.msk.f32.vlgmr.msra.gmra.mxu1 %vm2816_vm9, %v271_v6  ;;  %v822_v6 = vld [vmem:[%s2814_s1 + $0x1f0] sm:$0xff]  ;;  %vm1197_vm9 = vcmask 8192  }
 0x1f1   :  { %998 = vmatprep.mubr.f32.mxu1 %v2156_v1 }
 0x2b0   :  { %v2016_v8 = vpop.f32.mrf.mxu1 }
 0x2b1   :  { %v375_v9 = vadd.f32 %v2016_v8, %v294_v7  ;;  %v821_v7 = vld [vmem:[%s2814_s1 + $0x1e0] sm:$0xff]  ;;  %v820_v8 = vld [vmem:[%s2814_s1 + $0x1d0] sm:$0xff] }
 0x2b2   :  { %v369_v11 = vpop.f32.mrf.mxu1 }
 0x2b3   :  { %vm379_vm11 = vcmp.ge.f32.partialorder %v375_v9, 0.0  ;;  %v381_v12 = vmul.f32 0.01, %v375_v9  ;;  %v370_v13 = vadd.f32 %v369_v11, %v289_v10  ;;  %v818_v10 = vld [vmem:[%s2814_s1 + $0x1b0] sm:$0xff]  ;;  %v817_v11 = vld [vmem:[%s2814_s1 + $0x1a0] sm:$0xff] }
 0x2b5   :  { %v383_v14 = vsel %vm379_vm11, %v375_v9, %v381_v12  ;;  %vm378_vm13 = vcmp.ge.f32.partialorder %v370_v13, 0.0  ;;  %v380_v15 = vmul.f32 0.01, %v370_v13  ;;  %vm723_vm11 = vcmask 31744   ;;  %v819_v9 = vld [vmem:[%s2814_s1 + $0x1c0] sm:$0xff]  ;;  %v816_v12 = vld [vmem:[%s2814_s1 + $0x190] sm:$0xff] }
 0x2b6   :  { %418 = vrot.lane.b32.xlu0 %v383_v14, %s2157_s14  ;;  %391 = vrot.lane.b32.xlu1 %v383_v14, %s2154_s11  ;;  %386 = vst.msk [vmem:[#allocation2 + $0x8] sm:$0xff] %vm2817_vm12, %v383_v14 }
 0x2b7   :  { %v382_v16 = vsel %vm378_vm13, %v370_v13, %v380_v15  ;;  %v815_v13 = vld [vmem:[%s2814_s1 + $0x180] sm:$0xff]  ;;  %vm835_vm13 = vcmask 1045504  }
 0x2b8   :  { %385 = vst.msk [vmem:[#allocation2] sm:$0xff] %vm2817_vm12, %v382_v16  ;;  %v813_v15 = vld [vmem:[%s2814_s1 + $0x160] sm:$0xff] }
 0x2ba   :  { %408 = vrot.lane.b32.xlu0 %v383_v14, %s2158_s15  ;;  %400 = vrot.lane.b32.xlu1 %v383_v14, %s2155_s12  ;;  %v814_v14 = vld [vmem:[%s2814_s1 + $0x170] sm:$0xff] }
 0x2be   :  { %416 = vrot.lane.b32.xlu0 %v382_v16, %s2157_s14  ;;  %389 = vrot.lane.b32.xlu1 %v382_v16, %s2154_s11 }
 0x2c2   :  { %406 = vrot.lane.b32.xlu0 %v382_v16, %s2158_s15  ;;  %398 = vrot.lane.b32.xlu1 %v382_v16, %s2155_s12  ;;  %v812_v16 = vld [vmem:[%s2814_s1 + $0x150] sm:$0xff] }
 0x2c6   :  { %434 = vperm.xlu1 %2131, %v425_v17   ;;  %v811_v17 = vld [vmem:[%s2814_s1 + $0x140] sm:$0xff] }
 0x328   :  { %v419_v18 = vpop.permute.xlu0 %418  ;;  %v392_v19 = vpop.permute.xlu1 %391 }
 0x329   :  { %397 = vst.msk [vmem:[#allocation2 + $0x8] sm:$0xff] %vm395_vm15, %v392_v19 }
 0x32a   :  { %415 = vst.msk [vmem:[#allocation2 + $0x28] sm:$0xff] %vm2817_vm12, %v392_v19  ;;  %v828_v19 = vld [vmem:[%s2814_s1 + $0x250] sm:$0xff] }
 0x32b   :  { %423 = vst.msk [vmem:[#allocation2 + $0x28] sm:$0xff] %vm395_vm15, %v419_v18  ;;  %v829_v18 = vld [vmem:[%s2814_s1 + $0x260] sm:$0x3f] }
 0x32c   :  { %v409_v20 = vpop.permute.xlu0 %408  ;;  %v401_v21 = vpop.permute.xlu1 %400 }
 0x32d   :  { %405 = vst.msk [vmem:[#allocation2 + $0x18] sm:$0xff] %vm2817_vm12, %v401_v21  ;;  %v910_v21 = vld [vmem:[%s2814_s1 + $0x288] sm:$0x3f] }
 0x32e   :  { %413 = vst.msk [vmem:[#allocation2 + $0x18] sm:$0xff] %vm395_vm15, %v409_v20  ;;  %v827_v20 = vld [vmem:[%s2814_s1 + $0x240] sm:$0xff]  ;;  %1895 = vmatprep.subr.msk.mxu1 %vm835_vm13, %v910_v21 }
 0x330   :  { %v417_v22 = vpop.permute.xlu0 %416  ;;  %v390_v23 = vpop.permute.xlu1 %389  ;;  %v427_v30 = vld [vmem:[#allocation2 + $0x8] sm:$0xff] }
 0x331   :  { %396 = vst.msk [vmem:[#allocation2] sm:$0xff] %vm395_vm15, %v390_v23 }
 0x332   :  { %414 = vst.msk [vmem:[#allocation2 + $0x20] sm:$0xff] %vm2817_vm12, %v390_v23  ;;  %v431_v24 = vld [vmem:[#allocation2 + $0x28] sm:$0xff]  ;;  %v713_v23 = vlaneseq }
 0x333   :  { %422 = vst.msk [vmem:[#allocation2 + $0x20] sm:$0xff] %vm395_vm15, %v417_v22  ;;  %2018 = vmatpush3.msra.mxu0 %v431_v24  ;;  %v909_v22 = vld [vmem:[%s2814_s1 + $0x280] sm:$0x3f] }
 0x334   :  { %2019 = vmatprep.subr.mxu0 %v2156_v1  ;;  %v407_v25 = vpop.permute.xlu0 %406  ;;  %v399_v26 = vpop.permute.xlu1 %398  ;;  %1896 = vmatpush1.msk.msra.mxu1 %vm835_vm13, %v909_v22  ;;  %v2456_v24 = vshrl.u32 %v713_v23, 7  ;;  %v1235_v22 = vld [vmem:[%s2814_s1 + $0x410] sm:$0xf] }
 0x335   :  { %404 = vst.msk [vmem:[#allocation2 + $0x10] sm:$0xff] %vm2817_vm12, %v399_v26  ;;  %v429_v28 = vld [vmem:[#allocation2 + $0x18] sm:$0xff]  ;;  %1037 = vmatprep.subr.mxu1 %v2156_v1  ;;  %vm1222_vm12 = vcmask 155800  }
 0x336   :  { %412 = vst.msk [vmem:[#allocation2 + $0x10] sm:$0xff] %vm395_vm15, %v407_v25  ;;  %v715_v25 = vsub.s32 0, %v2456_v24  ;;  %v1888_v26 = vld [vmem:[%s2814_s1 + $0x130] ss:$8 sm:$0x3] }
 0x338   :  { %v426_v32 = vld [vmem:[#allocation2] sm:$0xff] }
 0x33a   :  { %v430_v27 = vld [vmem:[#allocation2 + $0x20] sm:$0xff] }
 0x33b   :  { %2020 = vmatpush3.msra.mxu0 %v430_v27  ;;  %v719_v27 = vsub.s32 1, %v2456_v24 }
 0x33c   :  { %2021 = vmatprep.subr.mxu0 %v2156_v1 }
 0x33d   :  { %2022 = vmatpush3.msra.mxu0 %v429_v28  ;;  %v428_v29 = vld [vmem:[#allocation2 + $0x10] sm:$0xff]  ;;  %v716_v28 = vrot.slane %v1888_v26, %v715_v25 }
 0x33e   :  { %2023 = vmatprep.subr.mxu0 %v2156_v1 }
 0x33f   :  { %2024 = vmatpush3.msra.mxu0 %v428_v29  ;;  %v720_v29 = vrot.slane %v1888_v26, %v719_v27 }
 0x340   :  { %2025 = vmatprep.subr.mxu0 %v2156_v1 }
 0x341   :  { %2026 = vmatpush3.msra.mxu0 %v427_v30  ;;  %v435_v33 = vpop.permute.xlu1 %434 }
 0x342   :  { %2027 = vmatprep.subr.mxu0 %v2156_v1 }
 0x343   :  { %2028 = vmatpush3.msra.mxu0 %v426_v32 }
 0x344   :  { %2030 = vmatmul.mubr.msk.f32.vlgmr.msra.gmra.mxu0 %vm437_vm0, %v424_v31  ;;  %2032 = vmatprep.subr.mxu0 %v2156_v1 }
 0x345   :  { %2038 = vmatprep.mubr.msk.f32.mxu0 %vm2160_vm14, %v2156_v1 }
 0x404   :  { %v507_v34 = vpop.f32.mrf.mxu0 }
 0x405   :  { %v508_v35 = vadd.f32 %v507_v34, %v435_v33 }
 0x406   :  { %v2031_v36 = vpop.f32.mrf.mxu0 }
 0x407   :  { %vm511_vm1 = vcmp.ge.f32.partialorder %v508_v35, 0.0  ;;  %v512_v37 = vmul.f32 0.01, %v508_v35 }
 0x409   :  { %v513_v38 = vsel %vm511_vm1, %v508_v35, %v512_v37 }
 0x40a   :  { %531 = vrot.lane.b32.xlu1 %v513_v38, %s2157_s14  ;;  %517 = vrot.lane.b32.xlu0 %v513_v38, %s2154_s11  ;;  %515 = vst.msk [vmem:[#allocation2] sm:$0xf] %vm514_vm3, %v513_v38 }
 0x40e   :  { %526 = vrot.lane.b32.xlu1 %v513_v38, %s2158_s15  ;;  %522 = vrot.lane.b32.xlu0 %v513_v38, %s2155_s12  ;;  %v830_v38 = vld [vmem:[%s2814_s1 + $0x270] ss:$0 sm:$0xff] }
 0x412   :  { %542 = vperm.xlu0 %2130, %v536_v39  }
 0x47c   :  { %v532_v40 = vpop.permute.xlu1 %531  ;;  %v518_v41 = vpop.permute.xlu0 %517 }
 0x47d   :  { %521 = vst.msk [vmem:[#allocation2] sm:$0xf] %vm520_vm4, %v518_v41 }
 0x47e   :  { %530 = vst.msk [vmem:[#allocation2 + $0x10] sm:$0xf] %vm514_vm3, %v518_v41  ;;  %v1026_v41 = vld [vmem:[%s2814_s1 + $0x390] sm:$0xff] }
 0x47f   :  { %534 = vst.msk [vmem:[#allocation2 + $0x10] sm:$0xf] %vm520_vm4, %v532_v40 }
 0x480   :  { %v527_v42 = vpop.permute.xlu1 %526  ;;  %v523_v43 = vpop.permute.xlu0 %522 }
 0x481   :  { %525 = vst.msk [vmem:[#allocation2 + $0x8] sm:$0xf] %vm514_vm3, %v523_v43  ;;  %v1025_v43 = vld [vmem:[%s2814_s1 + $0x380] sm:$0xff] }
 0x482   :  { %529 = vst.msk [vmem:[#allocation2 + $0x8] sm:$0xf] %vm520_vm4, %v527_v42 }
 0x484   :  { %v537_v47 = vld [vmem:[#allocation2] sm:$0xff] }
 0x486   :  { %v539_v44 = vld [vmem:[#allocation2 + $0x10] sm:$0xff] }
 0x487   :  { %2033 = vmatpush3.msra.mxu0 %v539_v44  ;;  %v1024_v44 = vld [vmem:[%s2814_s1 + $0x370] sm:$0xff] }
 0x488   :  { %2034 = vmatprep.subr.mxu0 %v2156_v1 }
 0x489   :  { %v538_v45 = vld [vmem:[#allocation2 + $0x8] sm:$0xff] }
 0x48a   :  { %2035 = vmatpush3.msra.mxu0 %v538_v45  ;;  %v1023_v45 = vld [vmem:[%s2814_s1 + $0x360] sm:$0xff] }
 0x48b   :  { %2036 = vmatprep.subr.mxu0 %v2156_v1 }
 0x48c   :  { %2037 = vmatpush3.msra.mxu0 %v537_v47  ;;  %v1021_v47 = vld [vmem:[%s2814_s1 + $0x340] sm:$0xff] }
 0x48d   :  { %2039 = vmatmul.mubr.msk.f32.vlgmr.msra.gmra.mxu0 %vm82_vm2, %v535_v46  ;;  %2041 = vmatprep.subr.mxu0 %v2156_v1  ;;  %v543_v49 = vpop.permute.xlu0 %542  ;;  %v1022_v46 = vld [vmem:[%s2814_s1 + $0x350] sm:$0xff] }
 0x48e   :  { %2043 = vmatprep.mubr.msk.f32.mxu0 %vm2160_vm14, %v2156_v1  ;;  %2042 = vmatpush3.msra.mxu0 %v629_v48  ;;  %v1020_v48 = vld [vmem:[%s2814_s1 + $0x330] sm:$0xff] }
 0x48f   :  { %1889 = vmatprep.subr.msk.mxu0 %vm727_vm8, %v709_v57  ;;  %v1011_v57 = vld [vmem:[%s2814_s1 + $0x2a0] sm:$0xff] }
 0x54d   :  { %v614_v50 = vpop.f32.mrf.mxu0 }
 0x54e   :  { %v615_v51 = vadd.f32 %v614_v50, %v543_v49  ;;  %v1019_v49 = vld [vmem:[%s2814_s1 + $0x320] sm:$0xff]  ;;  %v1018_v50 = vld [vmem:[%s2814_s1 + $0x310] sm:$0xff] }
 0x54f   :  { %v2040_v52 = vpop.f32.mrf.mxu0 }
 0x550   :  { %v619_v53 = vmul.f32 0.01, %v615_v51  ;;  %vm618_vm5 = vcmp.ge.f32.partialorder %v615_v51, 0.0  ;;  %v1016_v52 = vld [vmem:[%s2814_s1 + $0x2f0] sm:$0xff] }
 0x552   :  { %v620_v54 = vsel %vm618_vm5, %v615_v51, %v619_v53  ;;  %vm831_vm5 = vcmask 179200   ;;  %v1017_v51 = vld [vmem:[%s2814_s1 + $0x300] sm:$0xff] }
 0x553   :  { %624 = vrot.lane.b32.xlu1 %v620_v54, %s2161_s23  ;;  %622 = vst.msk [vmem:[#allocation3] sm:$0x1] %vm621_vm6, %v620_v54  ;;  %v1015_v53 = vld [vmem:[%s2814_s1 + $0x2e0] sm:$0xff]  ;;  %v1014_v54 = vld [vmem:[%s2814_s1 + $0x2d0] sm:$0xff]  ;;  %s2163_s23 = smov 1  }
 0x5c5   :  { %v625_v55 = vpop.permute.xlu1 %624 }
 0x5c6   :  { %627 = vst.msk [vmem:[#allocation3 + $0x1] sm:$0x1] %vm621_vm6, %v625_v55  ;;  %v1013_v55 = vld [vmem:[%s2814_s1 + $0x2c0] sm:$0xff] }
 0x5cd   :  { %v628_v56 = vld [vmem:[#allocation3] sm:$0x3] }
 0x5ce   :  { %2044 = vmatmul.mubr.msk.f32.vlgmr.msra.gmra.mxu0 %vm631_vm7, %v628_v56  ;;  %v1012_v56 = vld [vmem:[%s2814_s1 + $0x2b0] sm:$0xff] }
 0x5cf   :  { %798 = vmatprep.mubr.f32.mxu0 %v2156_v1  ;;  %1890 = vmatpush1.msk.msra.mxu0 %vm727_vm8, %v708_v58  ;;  %v1029_v58 = vld [vmem:[%s2814_s1 + $0x3c0] sm:$0x3f] }
 0x5d0   :  { %839 = vmatprep.subr.mxu0 %v2156_v1 }
 0x68e   :  { %v701_v60 = vpop.f32.mrf.mxu0 }
 0x68f   :  { %v702_v61 = vadd.f32 %v701_v60, %v630_v59  ;;  %v1028_v59 = vld [vmem:[%s2814_s1 + $0x3b0] sm:$0xff]  ;;  %v1027_v60 = vld [vmem:[%s2814_s1 + $0x3a0] sm:$0xff] }
 0x690   :  { %v2045_v62 = vpop.f32.mrf.mxu0 }
 0x691   :  { %vm705_vm10 = vcmp.ge.f32.partialorder %v702_v61, 0.0  ;;  %v706_v63 = vmul.f32 0.01, %v702_v61 }
 0x693   :  { %v707_v2 = vsel %vm705_vm10, %v702_v61, %v706_v63  ;;  %vm924_vm10 = vcmask 48128   ;;  %v1894_v61 = vld [vmem:[%s2814_s1 + $0x290] ss:$8 sm:$0x3] }
 0x694   :  { %1891 = vmatmul.mubr.msk.f32.vlgmr.msra.gmra.mxu0 %vm723_vm11, %v707_v2  ;;  %v917_v62 = vrot.slane %v1894_v61, %v715_v25  ;;  %v921_v63 = vrot.slane %v1894_v61, %v719_v27  ;;  %v1517_v61 = vld [vmem:[%s2814_s1 + $0x4d0] sm:$0xff] }
 0x695   :  { %840 = vmatpush1.msra.mxu0 %v826_v0 }
 0x696   :  { %841 = vmatprep.subr.mxu0 %v2156_v1 }
 0x697   :  { %842 = vmatpush1.msra.mxu0 %v825_v3 }
 0x698   :  { %843 = vmatprep.subr.mxu0 %v2156_v1 }
 0x699   :  { %844 = vmatpush1.msra.mxu0 %v824_v4 }
 0x69a   :  { %845 = vmatprep.subr.mxu0 %v2156_v1 }
 0x69b   :  { %846 = vmatpush1.msra.mxu0 %v823_v5 }
 0x69c   :  { %847 = vmatprep.subr.mxu0 %v2156_v1 }
 0x69d   :  { %848 = vmatpush1.msra.mxu0 %v822_v6 }
 0x69e   :  { %849 = vmatprep.subr.mxu0 %v2156_v1 }
 0x69f   :  { %850 = vmatpush1.msra.mxu0 %v821_v7 }
 0x6a0   :  { %851 = vmatprep.subr.mxu0 %v2156_v1 }
 0x6a1   :  { %852 = vmatpush1.msra.mxu0 %v820_v8 }
 0x6a2   :  { %853 = vmatprep.subr.mxu0 %v2156_v1 }
 0x6a3   :  { %854 = vmatpush1.msra.mxu0 %v819_v9  ;;  %v1110_v9 = vld [vmem:[%s2814_s1 + $0x3e0] sm:$0xf] }
 0x6a4   :  { %855 = vmatprep.subr.mxu0 %v2156_v1 }
 0x6a5   :  { %856 = vmatpush1.msra.mxu0 %v818_v10  ;;  %v1030_v10 = vld [vmem:[%s2814_s1 + $0x3d0] ss:$0 sm:$0xff] }
 0x6a6   :  { %857 = vmatprep.subr.mxu0 %v2156_v1 }
 0x6a7   :  { %858 = vmatpush1.msra.mxu0 %v817_v11 }
 0x6a8   :  { %859 = vmatprep.subr.mxu0 %v2156_v1 }
 0x6a9   :  { %860 = vmatpush1.msra.mxu0 %v816_v12 }
 0x6aa   :  { %861 = vmatprep.subr.mxu0 %v2156_v1 }
 0x6ab   :  { %862 = vmatpush1.msra.mxu0 %v815_v13 }
 0x6ac   :  { %863 = vmatprep.subr.mxu0 %v2156_v1 }
 0x6ad   :  { %864 = vmatpush1.msra.mxu0 %v814_v14 }
 0x6ae   :  { %865 = vmatprep.subr.mxu0 %v2156_v1 }
 0x6af   :  { %866 = vmatpush1.msra.mxu0 %v813_v15 }
 0x6b0   :  { %867 = vmatprep.subr.mxu0 %v2156_v1 }
 0x6b1   :  { %868 = vmatpush1.msra.mxu0 %v812_v16  ;;  %v1111_v16 = vld [vmem:[%s2814_s1 + $0x3f0] ss:$0 sm:$0xff] }
 0x6b2   :  { %869 = vmatprep.subr.mxu0 %v2156_v1 }
 0x6b3   :  { %870 = vmatpush1.msra.mxu0 %v811_v17 }
 0x6b4   :  { %897 = vmatprep.subr.mxu0 %v2156_v1 }
 0x6b5   :  { %1892 = vmatpush2.msk.msra.mxu0 %vm835_vm13, %v829_v18 }
 0x6b6   :  { %899 = vmatprep.subr.mxu0 %v2156_v1 }
 0x6b7   :  { %900 = vmatpush2.msra.mxu0 %v828_v19 }
 0x6b8   :  { %901 = vmatprep.subr.mxu0 %v2156_v1 }
 0x6b9   :  { %902 = vmatpush2.msra.mxu0 %v827_v20 }
 0x6ba   :  { %2046 = vmatprep.subr.mxu0 %v2156_v1 }
 0x754   :  { %v800_v30 = vpop.f32.mrf.mxu0 }
 0x755   :  { %v801_v31 = vadd.f32 %v800_v30, %v716_v28  ;;  %v1234_v30 = vld [vmem:[%s2814_s1 + $0x400] sm:$0xf] }
 0x756   :  { %v802_v32 = vpop.f32.mrf.mxu0 }
 0x757   :  { %v803_v33 = vadd.f32 %v802_v32, %v720_v29  ;;  %v807_v34 = vmul.f32 0.01, %v801_v31  ;;  %vm805_vm15 = vcmp.ge.f32.partialorder %v801_v31, 0.0 }
 0x759   :  { %vm806_vm1 = vcmp.ge.f32.partialorder %v803_v33, 0.0  ;;  %v808_v35 = vmul.f32 0.01, %v803_v33  ;;  %v809_v37 = vsel %vm805_vm15, %v801_v31, %v807_v34 }
 0x75b   :  { %v810_v36 = vsel %vm806_vm1, %v803_v33, %v808_v35 }
 0x75c   :  { %1893 = vmatprep.mubr.msk.f32.mxu0 %vm831_vm5, %v810_v36 }
 0x75d   :  { %904 = vmatmul.mubr.f32.vlgmr.msra.gmra.mxu0 %v809_v37 }
 0x75e   :  { %2048 = vmatprep.mubr.msk.f32.mxu0 %vm2160_vm14, %v2156_v1  ;;  %2047 = vmatpush3.msk.msra.mxu0 %vm727_vm8, %v1110_v9 }
 0x75f   :  { %2051 = vmatprep.subr.mxu0 %v2156_v1 }
 0x81d   :  { %v905_v39 = vpop.f32.mrf.mxu0 }
 0x81e   :  { %v906_v40 = vadd.f32 %v905_v39, %v830_v38  ;;  %v1339_v38 = vld [vmem:[%s2814_s1 + $0x420] sm:$0xff] }
 0x81f   :  { %v907_v42 = vpop.f32.mrf.mxu0  ;;  %v1341_v39 = vld [vmem:[%s2814_s1 + $0x440] sm:$0xff] }
 0x820   :  { %1897 = vmatmul.mubr.msk.f32.vlgmr.msra.gmra.mxu1 %vm924_vm10, %v906_v40  ;;  %vm1232_vm10 = vcmask 155792   ;;  %v1342_v40 = vld [vmem:[%s2814_s1 + $0x450] sm:$0xff] }
 0x821   :  { %1038 = vmatpush1.msra.mxu1 %v1026_v41 }
 0x822   :  { %1039 = vmatprep.subr.mxu1 %v2156_v1 }
 0x823   :  { %1040 = vmatpush1.msra.mxu1 %v1025_v43 }
 0x824   :  { %1041 = vmatprep.subr.mxu1 %v2156_v1 }
 0x825   :  { %1042 = vmatpush1.msra.mxu1 %v1024_v44 }
 0x826   :  { %1043 = vmatprep.subr.mxu1 %v2156_v1 }
 0x827   :  { %1044 = vmatpush1.msra.mxu1 %v1023_v45 }
 0x828   :  { %1045 = vmatprep.subr.mxu1 %v2156_v1 }
 0x829   :  { %1046 = vmatpush1.msra.mxu1 %v1022_v46 }
 0x82a   :  { %1047 = vmatprep.subr.mxu1 %v2156_v1 }
 0x82b   :  { %1048 = vmatpush1.msra.mxu1 %v1021_v47 }
 0x82c   :  { %1049 = vmatprep.subr.mxu1 %v2156_v1 }
 0x82d   :  { %1050 = vmatpush1.msra.mxu1 %v1020_v48  ;;  %v1340_v48 = vld [vmem:[%s2814_s1 + $0x430] sm:$0xff] }
 0x82e   :  { %1051 = vmatprep.subr.mxu1 %v2156_v1 }
 0x82f   :  { %1052 = vmatpush1.msra.mxu1 %v1019_v49 }
 0x830   :  { %1053 = vmatprep.subr.mxu1 %v2156_v1 }
 0x831   :  { %1054 = vmatpush1.msra.mxu1 %v1018_v50 }
 0x832   :  { %1055 = vmatprep.subr.mxu1 %v2156_v1 }
 0x833   :  { %1056 = vmatpush1.msra.mxu1 %v1017_v51 }
 0x834   :  { %1057 = vmatprep.subr.mxu1 %v2156_v1 }
 0x835   :  { %1058 = vmatpush1.msra.mxu1 %v1016_v52 }
 0x836   :  { %1059 = vmatprep.subr.mxu1 %v2156_v1 }
 0x837   :  { %1060 = vmatpush1.msra.mxu1 %v1015_v53 }
 0x838   :  { %1061 = vmatprep.subr.mxu1 %v2156_v1 }
 0x839   :  { %1062 = vmatpush1.msra.mxu1 %v1014_v54 }
 0x83a   :  { %1063 = vmatprep.subr.mxu1 %v2156_v1 }
 0x83b   :  { %1064 = vmatpush1.msra.mxu1 %v1013_v55 }
 0x83c   :  { %1065 = vmatprep.subr.mxu1 %v2156_v1 }
 0x83d   :  { %1066 = vmatpush1.msra.mxu1 %v1012_v56 }
 0x83e   :  { %1067 = vmatprep.subr.mxu1 %v2156_v1 }
 0x83f   :  { %1068 = vmatpush1.msra.mxu1 %v1011_v57 }
 0x840   :  { %1095 = vmatprep.subr.mxu1 %v2156_v1 }
 0x841   :  { %1898 = vmatpush2.msk.msra.mxu1 %vm835_vm13, %v1029_v58 }
 0x842   :  { %1097 = vmatprep.subr.mxu1 %v2156_v1 }
 0x843   :  { %1098 = vmatpush2.msra.mxu1 %v1028_v59  ;;  %v1510_v59 = vld [vmem:[%s2814_s1 + $0x460] sm:$0xff] }
 0x844   :  { %1099 = vmatprep.subr.mxu1 %v2156_v1 }
 0x845   :  { %1100 = vmatpush2.msra.mxu1 %v1027_v60  ;;  %v1516_v60 = vld [vmem:[%s2814_s1 + $0x4c0] sm:$0xff] }
 0x8e0   :  { %v1000_v0 = vpop.f32.mrf.mxu1 }
 0x8e1   :  { %v1001_v2 = vadd.f32 %v1000_v0, %v917_v62  ;;  %v1514_v62 = vld [vmem:[%s2814_s1 + $0x4a0] sm:$0xff] }
 0x8e2   :  { %v1002_v3 = vpop.f32.mrf.mxu1 }
 0x8e3   :  { %v1003_v4 = vadd.f32 %v1002_v3, %v921_v63  ;;  %v1007_v5 = vmul.f32 0.01, %v1001_v2  ;;  %vm1005_vm13 = vcmp.ge.f32.partialorder %v1001_v2, 0.0  ;;  %v1515_v63 = vld [vmem:[%s2814_s1 + $0x4b0] sm:$0xff] }
 0x8e5   :  { %vm1006_vm15 = vcmp.ge.f32.partialorder %v1003_v4, 0.0  ;;  %v1008_v6 = vmul.f32 0.01, %v1003_v4  ;;  %v1009_v8 = vsel %vm1005_vm13, %v1001_v2, %v1007_v5  ;;  %vm1211_vm13 = vcmask 0  }
 0x8e7   :  { %v1010_v7 = vsel %vm1006_vm15, %v1003_v4, %v1008_v6  ;;  %vm1213_vm15 = vcmask 73800  }
 0x8e8   :  { %1899 = vmatprep.mubr.msk.f32.mxu1 %vm831_vm5, %v1010_v7  ;;  %vm1225_vm5 = vcmask 73792  }
 0x8e9   :  { %1102 = vmatmul.mubr.f32.vlgmr.msra.gmra.mxu1 %v1009_v8 }
 0x8ea   :  { %2066 = vmatprep.mubr.msk.f32.mxu1 %vm82_vm2, %v1339_v38  ;;  %v1772_v38 = vld [vmem:[%s2814_s1 + $0x4f0] sm:$0xf] }
 0x9a9   :  { %v1103_v11 = vpop.f32.mrf.mxu1 }
 0x9aa   :  { %v1104_v12 = vadd.f32 %v1103_v11, %v1030_v10 }
 0x9ab   :  { %v1105_v13 = vpop.f32.mrf.mxu1 }
 0x9ac   :  { %vm1107_vm1 = vcmp.ge.f32.partialorder %v1104_v12, 0.0  ;;  %v1108_v14 = vmul.f32 0.01, %v1104_v12 }
 0x9ae   :  { %v1109_v15 = vsel %vm1107_vm1, %v1104_v12, %v1108_v14  ;;  %vm1195_vm1 = vcmask 73744  }
 0x9af   :  { %2049 = vmatmul.mubr.msk.f32.vlgmr.msra.gmra.mxu0 %vm723_vm11, %v1109_v15  ;;  %vm1209_vm11 = vcmask 65544   ;;  %v1511_v15 = vld [vmem:[%s2814_s1 + $0x470] sm:$0xff] }
 0x9b0   :  { %2057 = vmatprep.mubr.msk.f32.mxu0 %vm2160_vm14, %v2156_v1 }
 0xa6f   :  { %v1184_v17 = vpop.f32.mrf.mxu0 }
 0xa70   :  { %v1185_v18 = vadd.f32 %v1184_v17, %v1111_v16  ;;  %v1512_v16 = vld [vmem:[%s2814_s1 + $0x480] sm:$0xff]  ;;  %v1513_v17 = vld [vmem:[%s2814_s1 + $0x490] sm:$0xff] }
 0xa71   :  { %v2050_v19 = vpop.f32.mrf.mxu0 }
 0xa72   :  { %vm1188_vm8 = vcmp.ge.f32.partialorder %v1185_v18, 0.0  ;;  %v1189_v20 = vmul.f32 0.01, %v1185_v18 }
 0xa74   :  { %v1190_v21 = vsel %vm1188_vm8, %v1185_v18, %v1189_v20  ;;  %vm1218_vm8 = vcmask 148569  }
 0xa75   :  { %1224 = vst.msk [vmem:[#allocation2 + $0x10] sm:$0x1] %vm621_vm6, %v1190_v21  ;;  %1227 = vrot.lane.b32.xlu1 %v1190_v21, %s2162_s22  ;;  %1206 = vrot.lane.b32.xlu0 %v1190_v21, %s2163_s23  ;;  %vm1230_vm6 = vcmask 140369  }
 0xa76   :  { %1226 = vst.msk [vmem:[#allocation2 + $0x10] sm:$0x1] %vm1225_vm5, %v2156_v1  ;;  %vm1220_vm5 = vcmask 82000  }
 0xa79   :  { %1192 = vrot.lane.b32.xlu1 %v1190_v21, %s2164_s24  ;;  %1215 = vrot.lane.b32.xlu0 %v1190_v21, %s2165_s25 }
 0xa7d   :  { %1241 = vperm.xlu1 %2131, %v1235_v22   ;;  %1199 = vrot.lane.b32.xlu0 %v1190_v21, %s2166_s28 }
 0xae7   :  { %v1228_v23 = vpop.permute.xlu1 %1227  ;;  %v1207_v24 = vpop.permute.xlu0 %1206 }
 0xae8   :  { %1231 = vst.msk [vmem:[#allocation2 + $0xf] sm:$0x2] %vm1230_vm6, %v1228_v23  ;;  %vm1202_vm6 = vcmask 156769  }
 0xae9   :  { %1210 = vst.msk [vmem:[#allocation2 + $0x8] sm:$0x1] %vm1209_vm11, %v1207_v24  ;;  %vm1204_vm11 = vcmask 90192  }
 0xaea   :  { %1233 = vst.msk [vmem:[#allocation2 + $0x10] sm:$0x1] %vm1232_vm10, %v2156_v1  ;;  %vm1478_vm10 = vcmask 7168  }
 0xaeb   :  { %1212 = vst.msk [vmem:[#allocation2 + $0x8] sm:$0x1] %vm1211_vm13, %v2156_v1  ;;  %v1193_v25 = vpop.permute.xlu1 %1192  ;;  %v1216_v26 = vpop.permute.xlu0 %1215  ;;  %vm1507_vm13 = vcmask 162960  }
 0xaec   :  { %1214 = vst.msk [vmem:[#allocation2 + $0x8] sm:$0x1] %vm1213_vm15, %v2156_v1  ;;  %vm1454_vm15 = vcmask 15360  }
 0xaed   :  { %1196 = vst.msk [vmem:[#allocation2] sm:$0x1] %vm1195_vm1, %v1193_v25  ;;  %vm1481_vm1 = vcmask 80968  }
 0xaee   :  { %1219 = vst.msk [vmem:[#allocation2 + $0x7] sm:$0x2] %vm1218_vm8, %v1216_v26  ;;  %vm1490_vm8 = vcmask 154712  }
 0xaef   :  { %1221 = vst.msk [vmem:[#allocation2 + $0x8] sm:$0x1] %vm1220_vm5, %v2156_v1  ;;  %v1200_v27 = vpop.permute.xlu0 %1199  ;;  %vm1493_vm5 = vcmask 89168  }
 0xaf0   :  { %1198 = vst.msk [vmem:[#allocation2] sm:$0x1] %vm1197_vm9, %v2156_v1 }
 0xaf1   :  { %1223 = vst.msk [vmem:[#allocation2 + $0x8] sm:$0x1] %vm1222_vm12, %v2156_v1  ;;  %v1238_v28 = vld [vmem:[#allocation2 + $0x10] sm:$0xff] }
 0xaf2   :  { %1203 = vst.msk [vmem:[#allocation2 - $0x1] sm:$0x2] %vm1202_vm6, %v1200_v27  ;;  %2052 = vmatpush3.msra.mxu0 %v1238_v28  ;;  %vm1496_vm6 = vcmask 162968  }
 0xaf3   :  { %1205 = vst.msk [vmem:[#allocation2] sm:$0x1] %vm1204_vm11, %v2156_v1  ;;  %2053 = vmatprep.subr.mxu0 %v2156_v1  ;;  %vm1463_vm11 = vcmask 162912  }
 0xaf8   :  { %v1237_v29 = vld [vmem:[#allocation2 + $0x8] sm:$0xff]  ;;  %v1242_v32 = vpop.permute.xlu1 %1241 }
 0xaf9   :  { %2054 = vmatpush3.msra.mxu0 %v1237_v29 }
 0xafa   :  { %2055 = vmatprep.subr.mxu0 %v2156_v1  ;;  %v1236_v31 = vld [vmem:[#allocation2] sm:$0xff] }
 0xafb   :  { %2056 = vmatpush3.msra.mxu0 %v1236_v31 }
 0xafc   :  { %2058 = vmatmul.mubr.msk.f32.vlgmr.msra.gmra.mxu0 %vm82_vm2, %v1234_v30 }
 0xafd   :  { %2081 = vmatprep.mubr.msk.f32.mxu0 %vm437_vm0, %v1510_v59 }
 0xbbc   :  { %v1313_v33 = vpop.f32.mrf.mxu0 }
 0xbbd   :  { %v1314_v34 = vadd.f32 %v1313_v33, %v1242_v32 }
 0xbbe   :  { %v2059_v35 = vpop.f32.mrf.mxu0 }
 0xbbf   :  { %vm1317_vm9 = vcmp.ge.f32.partialorder %v1314_v34, 0.0  ;;  %v1318_v36 = vmul.f32 0.01, %v1314_v34 }
 0xbc1   :  { %v1319_v37 = vsel %vm1317_vm9, %v1314_v34, %v1318_v36  ;;  %vm1466_vm9 = vcmask 97360  }
 0xbc2   :  { %1320 = vst.msk [vmem:[#allocation2] sm:$0xf] %vm514_vm3, %v1319_v37  ;;  %1335 = vrot.lane.b32.xlu1 %v1319_v37, %s2157_s14  ;;  %1322 = vrot.lane.b32.xlu0 %v1319_v37, %s2154_s11  ;;  %s2167_s14 = smov 3  }
 0xbc6   :  { %1330 = vrot.lane.b32.xlu1 %v1319_v37, %s2158_s15  ;;  %1326 = vrot.lane.b32.xlu0 %v1319_v37, %s2155_s12 }
 0xbca   :  { %1348 = vperm.xlu1 %2131, %v1341_v39   ;;  %1353 = vperm.xlu0 %2130, %v1342_v40  }
 0xc34   :  { %v1336_v41 = vpop.permute.xlu1 %1335  ;;  %v1323_v42 = vpop.permute.xlu0 %1322 }
 0xc35   :  { %1325 = vst.msk [vmem:[#allocation2] sm:$0xf] %vm520_vm4, %v1323_v42 }
 0xc36   :  { %1334 = vst.msk [vmem:[#allocation2 + $0x10] sm:$0xf] %vm514_vm3, %v1323_v42 }
 0xc37   :  { %1338 = vst.msk [vmem:[#allocation2 + $0x10] sm:$0xf] %vm520_vm4, %v1336_v41 }
 0xc38   :  { %v1331_v43 = vpop.permute.xlu1 %1330  ;;  %v1327_v44 = vpop.permute.xlu0 %1326 }
 0xc39   :  { %1329 = vst.msk [vmem:[#allocation2 + $0x8] sm:$0xf] %vm514_vm3, %v1327_v44  ;;  %vm1501_vm3 = vcmask 80960  }
 0xc3a   :  { %1333 = vst.msk [vmem:[#allocation2 + $0x8] sm:$0xf] %vm520_vm4, %v1331_v43 }
 0xc3c   :  { %v1343_v47 = vld [vmem:[#allocation2] sm:$0xff] }
 0xc3e   :  { %v1345_v45 = vld [vmem:[#allocation2 + $0x10] sm:$0xff] }
 0xc3f   :  { %2060 = vmatprep.subr.mxu1 %v1345_v45 }
 0xc40   :  { %2061 = vmatpush3.msra.mxu1 %v1345_v45 }
 0xc41   :  { %v1344_v46 = vld [vmem:[#allocation2 + $0x8] sm:$0xff] }
 0xc42   :  { %2062 = vmatprep.subr.mxu1 %v1344_v46 }
 0xc43   :  { %2063 = vmatpush3.msra.mxu1 %v1344_v46 }
 0xc44   :  { %2064 = vmatprep.subr.mxu1 %v1343_v47 }
 0xc45   :  { %2065 = vmatpush3.msra.mxu1 %v1343_v47  ;;  %v1354_v49 = vpop.permute.xlu0 %1353  ;;  %v1349_v52 = vpop.permute.xlu1 %1348 }
 0xc46   :  { %2067 = vmatmul.mubr.msk.f32.vlgmr.msra.gmra.mxu1 %vm82_vm2, %v1340_v48  ;;  %2087 = vmatprep.subr.mxu1 %v2156_v1  ;;  %vm1475_vm2 = vcmask 72712  }
 0xc47   :  { %2111 = vmatprep.mubr.msk.f32.mxu1 %vm2160_vm14, %v2156_v1  ;;  %vm1504_vm14 = vcmask 146512  }
 0xd06   :  { %v2068_v50 = vpop.f32.mrf.mxu1 }
 0xd07   :  { %v1434_v51 = vadd.f32 %v2068_v50, %v1354_v49 }
 0xd08   :  { %v1428_v53 = vpop.f32.mrf.mxu1 }
 0xd09   :  { %vm1438_vm12 = vcmp.ge.f32.partialorder %v1434_v51, 0.0  ;;  %v1440_v54 = vmul.f32 0.01, %v1434_v51  ;;  %v1429_v55 = vadd.f32 %v1428_v53, %v1349_v52 }
 0xd0b   :  { %v1442_v56 = vsel %vm1438_vm12, %v1434_v51, %v1440_v54  ;;  %vm1437_vm4 = vcmp.ge.f32.partialorder %v1429_v55, 0.0  ;;  %v1439_v57 = vmul.f32 0.01, %v1429_v55 }
 0xd0c   :  { %1500 = vst.msk [vmem:[#allocation2 + $0x28] sm:$0xff] %vm631_vm7, %v1442_v56  ;;  %1471 = vrot.lane.b32.xlu1 %v1442_v56, %s2163_s23  ;;  %1447 = vrot.lane.b32.xlu0 %v1442_v56, %s2164_s24 }
 0xd0d   :  { %v1441_v58 = vsel %vm1437_vm4, %v1429_v55, %v1439_v57  ;;  %1503 = vst.msk [vmem:[#allocation2 + $0x28] sm:$0xff] %vm1501_vm3, %v2156_v1  ;;  %vm2818_vm4 = vcmask 80896  }
 0xd0e   :  { %1499 = vst.msk [vmem:[#allocation2 + $0x20] sm:$0xff] %vm631_vm7, %v1441_v58  ;;  %vm1451_vm7 = vcmask 80912  }
 0xd0f   :  { %1502 = vst.msk [vmem:[#allocation2 + $0x20] sm:$0xff] %vm1501_vm3, %v2156_v1 }
 0xd10   :  { %1469 = vrot.lane.b32.xlu1 %v1441_v58, %s2163_s23  ;;  %1445 = vrot.lane.b32.xlu0 %v1441_v58, %s2164_s24 }
 0xd14   :  { %1484 = vrot.lane.b32.xlu1 %v1441_v58, %s2167_s14  ;;  %1486 = vrot.lane.b32.xlu0 %v1442_v56, %s2167_s14 }
 0xd18   :  { %1457 = vrot.lane.b32.xlu1 %v1441_v58, %s2168_s10  ;;  %1459 = vrot.lane.b32.xlu0 %v1442_v56, %s2168_s10 }
 0xd1c   :  { %1536 = vperm.xlu1 %2131, %v1516_v60   ;;  %1541 = vperm.xlu0 %2130, %v1517_v61  }
 0xd20   :  { %1526 = vperm.xlu1 %2131, %v1514_v62   ;;  %1531 = vperm.xlu0 %2130, %v1515_v63  }
 0xd7e   :  { %v1472_v0 = vpop.permute.xlu1 %1471  ;;  %v1448_v2 = vpop.permute.xlu0 %1447 }
 0xd7f   :  { %1477 = vst.msk [vmem:[#allocation2 + $0x18] sm:$0xff] %vm1475_vm2, %v1472_v0 }
 0xd80   :  { %1506 = vst.msk [vmem:[#allocation2 + $0x28] sm:$0xff] %vm1504_vm14, %v1448_v2 }
 0xd81   :  { %1453 = vst.msk [vmem:[#allocation2 + $0x8] sm:$0xff] %vm1451_vm7, %v1448_v2 }
 0xd82   :  { %1480 = vst.msk [vmem:[#allocation2 + $0x18] sm:$0xff] %vm1478_vm10, %v2156_v1  ;;  %v1470_v3 = vpop.permute.xlu1 %1469  ;;  %v1446_v4 = vpop.permute.xlu0 %1445 }
 0xd83   :  { %1509 = vst.msk [vmem:[#allocation2 + $0x28] sm:$0xff] %vm1507_vm13, %v2156_v1 }
 0xd84   :  { %1456 = vst.msk [vmem:[#allocation2 + $0x8] sm:$0xff] %vm1454_vm15, %v2156_v1 }
 0xd85   :  { %1483 = vst.msk [vmem:[#allocation2 + $0x18] sm:$0xff] %vm1481_vm1, %v2156_v1 }
 0xd86   :  { %1476 = vst.msk [vmem:[#allocation2 + $0x10] sm:$0xff] %vm1475_vm2, %v1470_v3  ;;  %v1485_v5 = vpop.permute.xlu1 %1484  ;;  %v1487_v6 = vpop.permute.xlu0 %1486  ;;  %vm2819_vm2 = vmmov %vm2818_vm4 }
 0xd87   :  { %1505 = vst.msk [vmem:[#allocation2 + $0x20] sm:$0xff] %vm1504_vm14, %v1446_v4 }
 0xd88   :  { %1452 = vst.msk [vmem:[#allocation2] sm:$0xff] %vm1451_vm7, %v1446_v4  ;;  %vm2820_vm7 = vmmov %vm2819_vm2  ;;  %v1771_v4 = vld [vmem:[%s2814_s1 + $0x4e0] sm:$0xf] }
 0xd89   :  { %1508 = vst.msk [vmem:[#allocation2 + $0x20] sm:$0xff] %vm1507_vm13, %v2156_v1  ;;  %vm2821_vm13 = vmmov %vm2819_vm2 }
 0xd8a   :  { %1479 = vst.msk [vmem:[#allocation2 + $0x10] sm:$0xff] %vm1478_vm10, %v2156_v1  ;;  %v1523_v7 = vld [vmem:[#allocation2 + $0x28] sm:$0xff]  ;;  %v1458_v8 = vpop.permute.xlu1 %1457  ;;  %v1460_v9 = vpop.permute.xlu0 %1459 }
 0xd8b   :  { %1455 = vst.msk [vmem:[#allocation2] sm:$0xff] %vm1454_vm15, %v2156_v1  ;;  %2069 = vmatprep.subr.mxu0 %v1523_v7 }
 0xd8c   :  { %1482 = vst.msk [vmem:[#allocation2 + $0x10] sm:$0xff] %vm1481_vm1, %v2156_v1  ;;  %2070 = vmatpush3.msra.mxu0 %v1523_v7  ;;  %vm1712_vm1 = vcmask 89096  }
 0xd8d   :  { %1491 = vst.msk [vmem:[#allocation2 + $0x10] sm:$0xff] %vm1490_vm8, %v1485_v5  ;;  %1492 = vst.msk [vmem:[#allocation2 + $0x18] sm:$0xff] %vm1490_vm8, %v1487_v6  ;;  %vm1669_vm8 = vcmask 97296  }
 0xd8e   :  { %1494 = vst.msk [vmem:[#allocation2 + $0x10] sm:$0xff] %vm1493_vm5, %v2156_v1  ;;  %1495 = vst.msk [vmem:[#allocation2 + $0x18] sm:$0xff] %vm1493_vm5, %v2156_v1  ;;  %vm1761_vm5 = vcmask 179296  }
 0xd8f   :  { %1497 = vst.msk [vmem:[#allocation2 + $0x10] sm:$0xff] %vm1496_vm6, %v2156_v1  ;;  %1498 = vst.msk [vmem:[#allocation2 + $0x18] sm:$0xff] %vm1496_vm6, %v2156_v1  ;;  %vm1766_vm6 = vcmask 195760  }
 0xd90   :  { %1464 = vst.msk [vmem:[#allocation2] sm:$0xff] %vm1463_vm11, %v1458_v8  ;;  %1465 = vst.msk [vmem:[#allocation2 + $0x8] sm:$0xff] %vm1463_vm11, %v1460_v9  ;;  %v1522_v10 = vld [vmem:[#allocation2 + $0x20] sm:$0xff]  ;;  %vm1721_vm11 = vcmask 97368  }
 0xd91   :  { %1467 = vst.msk [vmem:[#allocation2] sm:$0xff] %vm1466_vm9, %v2156_v1  ;;  %1468 = vst.msk [vmem:[#allocation2 + $0x8] sm:$0xff] %vm1466_vm9, %v2156_v1  ;;  %2071 = vmatprep.subr.mxu0 %v1522_v10 }
 0xd92   :  { %2072 = vmatpush3.msra.mxu0 %v1522_v10 }
 0xd96   :  { %v1521_v11 = vld [vmem:[#allocation2 + $0x18] sm:$0xff]  ;;  %v1520_v12 = vld [vmem:[#allocation2 + $0x10] sm:$0xff] }
 0xd97   :  { %2073 = vmatprep.subr.mxu0 %v1521_v11  ;;  %v1542_v18 = vpop.permute.xlu0 %1541  ;;  %v1537_v19 = vpop.permute.xlu1 %1536 }
 0xd98   :  { %2074 = vmatpush3.msra.mxu0 %v1521_v11  ;;  %v1519_v13 = vld [vmem:[#allocation2 + $0x8] sm:$0xff]  ;;  %v1518_v14 = vld [vmem:[#allocation2] sm:$0xff] }
 0xd99   :  { %2075 = vmatprep.subr.mxu0 %v1520_v12 }
 0xd9a   :  { %2076 = vmatpush3.msra.mxu0 %v1520_v12 }
 0xd9b   :  { %2077 = vmatprep.subr.mxu0 %v1519_v13  ;;  %v1532_v20 = vpop.permute.xlu0 %1531  ;;  %v1527_v23 = vpop.permute.xlu1 %1526 }
 0xd9c   :  { %2078 = vmatpush3.msra.mxu0 %v1519_v13 }
 0xd9d   :  { %2079 = vmatprep.subr.mxu0 %v1518_v14 }
 0xd9e   :  { %2080 = vmatpush3.msra.mxu0 %v1518_v14 }
 0xd9f   :  { %2082 = vmatmul.mubr.msk.f32.vlgmr.msra.gmra.mxu0 %vm437_vm0, %v1511_v15 }
 0xda0   :  { %2084 = vmatprep.mubr.msk.f32.mxu0 %vm437_vm0, %v1512_v16 }
 0xda3   :  { %2085 = vmatmul.mubr.msk.f32.gmra.mxu0 %vm437_vm0, %v1513_v17 }
 0xe5f   :  { %v2083_v21 = vpop.f32.mrf.mxu0 }
 0xe60   :  { %v1628_v22 = vadd.f32 %v2083_v21, %v1532_v20 }
 0xe61   :  { %v1622_v24 = vpop.f32.mrf.mxu0 }
 0xe62   :  { %vm1642_vm12 = vcmp.ge.f32.partialorder %v1628_v22, 0.0  ;;  %v1646_v25 = vmul.f32 0.01, %v1628_v22  ;;  %v1623_v26 = vadd.f32 %v1622_v24, %v1527_v23 }
 0xe63   :  { %v2086_v27 = vpop.f32.mrf.mxu0 }
 0xe64   :  { %v1650_v28 = vsel %vm1642_vm12, %v1628_v22, %v1646_v25  ;;  %vm1641_vm3 = vcmp.ge.f32.partialorder %v1623_v26, 0.0  ;;  %v1645_v29 = vmul.f32 0.01, %v1623_v26  ;;  %v1638_v30 = vadd.f32 %v2086_v27, %v1542_v18 }
 0xe65   :  { %1754 = vst.msk [vmem:[#allocation2 + $0x48] sm:$0xff] %vm2818_vm4, %v1650_v28  ;;  %1702 = vrot.lane.b32.xlu1 %v1650_v28, %s2163_s23  ;;  %1659 = vrot.lane.b32.xlu0 %v1650_v28, %s2164_s24  ;;  %v1632_v31 = vpop.f32.mrf.mxu0  ;;  %vm1743_vm12 = vcmask 105568   ;;  %vm2822_vm4 = vcmask 785408  }
 0xe66   :  { %v1649_v32 = vsel %vm1641_vm3, %v1623_v26, %v1645_v29  ;;  %1758 = vst.msk [vmem:[#allocation2 + $0x48] sm:$0xff] %vm1466_vm9, %v2156_v1  ;;  %vm1644_vm0 = vcmp.ge.f32.partialorder %v1638_v30, 0.0  ;;  %v1648_v33 = vmul.f32 0.01, %v1638_v30  ;;  %v1633_v34 = vadd.f32 %v1632_v31, %v1537_v19 }
 0xe67   :  { %1753 = vst.msk [vmem:[#allocation2 + $0x40] sm:$0xff] %vm2819_vm2, %v1649_v32  ;;  %vm1748_vm3 = vcmask 195768  }
 0xe68   :  { %v1652_v35 = vsel %vm1644_vm0, %v1638_v30, %v1648_v33  ;;  %1757 = vst.msk [vmem:[#allocation2 + $0x40] sm:$0xff] %vm1466_vm9, %v2156_v1  ;;  %vm1643_vm14 = vcmp.ge.f32.partialorder %v1633_v34, 0.0  ;;  %v1647_v36 = vmul.f32 0.01, %v1633_v34  ;;  %vm1863_vm0 = vcmask 191488  }
 0xe69   :  { %1756 = vst.msk [vmem:[#allocation2 + $0x58] sm:$0xff] %vm2820_vm7, %v1652_v35  ;;  %1706 = vrot.lane.b32.xlu1 %v1652_v35, %s2163_s23  ;;  %1657 = vrot.lane.b32.xlu0 %v1649_v32, %s2164_s24 }
 0xe6a   :  { %1760 = vst.msk [vmem:[#allocation2 + $0x58] sm:$0xff] %vm1466_vm9, %v2156_v1  ;;  %v1651_v37 = vsel %vm1643_vm14, %v1633_v34, %v1647_v36 }
 0xe6b   :  { %1755 = vst.msk [vmem:[#allocation2 + $0x50] sm:$0xff] %vm2821_vm13, %v1651_v37 }
 0xe6c   :  { %1759 = vst.msk [vmem:[#allocation2 + $0x50] sm:$0xff] %vm1466_vm9, %v2156_v1  ;;  %vm1738_vm9 = vcmask 187496  }
 0xe6d   :  { %1661 = vrot.lane.b32.xlu1 %v1651_v37, %s2164_s24  ;;  %1663 = vrot.lane.b32.xlu0 %v1652_v35, %s2164_s24 }
 0xe71   :  { %1704 = vrot.lane.b32.xlu1 %v1651_v37, %s2163_s23  ;;  %1732 = vrot.lane.b32.xlu0 %v1652_v35, %s2167_s14 }
 0xe75   :  { %1700 = vrot.lane.b32.xlu1 %v1649_v32, %s2163_s23  ;;  %1730 = vrot.lane.b32.xlu0 %v1651_v37, %s2167_s14 }
 0xe79   :  { %1726 = vrot.lane.b32.xlu1 %v1649_v32, %s2167_s14  ;;  %1728 = vrot.lane.b32.xlu0 %v1650_v28, %s2167_s14 }
 0xe7d   :  { %1682 = vrot.lane.b32.xlu1 %v1651_v37, %s2168_s10  ;;  %1684 = vrot.lane.b32.xlu0 %v1652_v35, %s2168_s10 }
 0xe81   :  { %1678 = vrot.lane.b32.xlu1 %v1649_v32, %s2168_s10  ;;  %1680 = vrot.lane.b32.xlu0 %v1650_v28, %s2168_s10 }
 0xe85   :  { %1787 = vperm.xlu0 %2130, %v1772_v38  }
 0xed7   :  { %v1703_v39 = vpop.permute.xlu1 %1702  ;;  %v1660_v40 = vpop.permute.xlu0 %1659 }
 0xed8   :  { %1714 = vst.msk [vmem:[#allocation2 + $0x28] sm:$0xff] %vm1712_vm1, %v1703_v39 }
 0xed9   :  { %1671 = vst.msk [vmem:[#allocation2 + $0x8] sm:$0xff] %vm1669_vm8, %v1660_v40 }
 0xeda   :  { %1763 = vst.msk [vmem:[#allocation2 + $0x48] sm:$0xff] %vm1761_vm5, %v1660_v40 }
 0xedb   :  { %1718 = vst.msk [vmem:[#allocation2 + $0x28] sm:$0xff] %vm1478_vm10, %v2156_v1  ;;  %v1707_v41 = vpop.permute.xlu1 %1706  ;;  %v1658_v42 = vpop.permute.xlu0 %1657 }
 0xedc   :  { %1768 = vst.msk [vmem:[#allocation2 + $0x48] sm:$0xff] %vm1766_vm6, %v2156_v1 }
 0xedd   :  { %1675 = vst.msk [vmem:[#allocation2 + $0x8] sm:$0xff] %vm1454_vm15, %v2156_v1 }
 0xede   :  { %1723 = vst.msk [vmem:[#allocation2 + $0x28] sm:$0xff] %vm1721_vm11, %v2156_v1 }
 0xedf   :  { %1716 = vst.msk [vmem:[#allocation2 + $0x38] sm:$0xff] %vm1712_vm1, %v1707_v41  ;;  %v1662_v43 = vpop.permute.xlu1 %1661  ;;  %v1664_v44 = vpop.permute.xlu0 %1663 }
 0xee0   :  { %1670 = vst.msk [vmem:[#allocation2] sm:$0xff] %vm1669_vm8, %v1658_v42  ;;  %1672 = vst.msk [vmem:[#allocation2 + $0x10] sm:$0xff] %vm1669_vm8, %v1662_v43 }
 0xee1   :  { %1762 = vst.msk [vmem:[#allocation2 + $0x40] sm:$0xff] %vm1761_vm5, %v1658_v42  ;;  %1764 = vst.msk [vmem:[#allocation2 + $0x50] sm:$0xff] %vm1761_vm5, %v1662_v43 }
 0xee2   :  { %1720 = vst.msk [vmem:[#allocation2 + $0x38] sm:$0xff] %vm1478_vm10, %v2156_v1 }
 0xee3   :  { %1767 = vst.msk [vmem:[#allocation2 + $0x40] sm:$0xff] %vm1766_vm6, %v2156_v1  ;;  %1769 = vst.msk [vmem:[#allocation2 + $0x50] sm:$0xff] %vm1766_vm6, %v2156_v1  ;;  %v1705_v45 = vpop.permute.xlu1 %1704  ;;  %v1733_v46 = vpop.permute.xlu0 %1732  ;;  %v1782_v51 = vld [vmem:[#allocation2 + $0x48] sm:$0xff] }
 0xee4   :  { %1674 = vst.msk [vmem:[#allocation2] sm:$0xff] %vm1454_vm15, %v2156_v1  ;;  %1676 = vst.msk [vmem:[#allocation2 + $0x10] sm:$0xff] %vm1454_vm15, %v2156_v1 }
 0xee5   :  { %1725 = vst.msk [vmem:[#allocation2 + $0x38] sm:$0xff] %vm1721_vm11, %v2156_v1 }
 0xee6   :  { %1673 = vst.msk [vmem:[#allocation2 + $0x18] sm:$0xff] %vm1669_vm8, %v1664_v44 }
 0xee7   :  { %1765 = vst.msk [vmem:[#allocation2 + $0x58] sm:$0xff] %vm1761_vm5, %v1664_v44  ;;  %v1701_v47 = vpop.permute.xlu1 %1700  ;;  %v1731_v48 = vpop.permute.xlu0 %1730 }
 0xee8   :  { %1770 = vst.msk [vmem:[#allocation2 + $0x58] sm:$0xff] %vm1766_vm6, %v2156_v1 }
 0xee9   :  { %1677 = vst.msk [vmem:[#allocation2 + $0x18] sm:$0xff] %vm1454_vm15, %v2156_v1  ;;  %vm1695_vm15 = vcmask 113760  }
 0xeea   :  { %1715 = vst.msk [vmem:[#allocation2 + $0x30] sm:$0xff] %vm1712_vm1, %v1705_v45  ;;  %1713 = vst.msk [vmem:[#allocation2 + $0x20] sm:$0xff] %vm1712_vm1, %v1701_v47  ;;  %v1783_v50 = vld [vmem:[#allocation2 + $0x50] sm:$0xff]  ;;  %v1781_v54 = vld [vmem:[#allocation2 + $0x40] sm:$0xff] }
 0xeeb   :  { %1742 = vst.msk [vmem:[#allocation2 + $0x38] sm:$0xff] %vm1738_vm9, %v1733_v46  ;;  %v1727_v52 = vpop.permute.xlu1 %1726  ;;  %v1729_v53 = vpop.permute.xlu0 %1728 }
 0xeec   :  { %1719 = vst.msk [vmem:[#allocation2 + $0x30] sm:$0xff] %vm1478_vm10, %v2156_v1  ;;  %1717 = vst.msk [vmem:[#allocation2 + $0x20] sm:$0xff] %vm1478_vm10, %v2156_v1  ;;  %vm1690_vm10 = vcmask 195696  }
 0xeed   :  { %1747 = vst.msk [vmem:[#allocation2 + $0x38] sm:$0xff] %vm1743_vm12, %v2156_v1 }
 0xeee   :  { %1752 = vst.msk [vmem:[#allocation2 + $0x38] sm:$0xff] %vm1748_vm3, %v2156_v1 }
 0xeef   :  { %1724 = vst.msk [vmem:[#allocation2 + $0x30] sm:$0xff] %vm1721_vm11, %v2156_v1  ;;  %v1784_v49 = vld [vmem:[#allocation2 + $0x58] sm:$0xff]  ;;  %1722 = vst.msk [vmem:[#allocation2 + $0x20] sm:$0xff] %vm1721_vm11, %v2156_v1  ;;  %v1683_v56 = vpop.permute.xlu1 %1682  ;;  %v1685_v57 = vpop.permute.xlu0 %1684 }
 0xef0   :  { %1741 = vst.msk [vmem:[#allocation2 + $0x30] sm:$0xff] %vm1738_vm9, %v1731_v48  ;;  %2088 = vmatpush3.msra.mxu1 %v1784_v49  ;;  %1739 = vst.msk [vmem:[#allocation2 + $0x20] sm:$0xff] %vm1738_vm9, %v1727_v52 }
 0xef1   :  { %1746 = vst.msk [vmem:[#allocation2 + $0x30] sm:$0xff] %vm1743_vm12, %v2156_v1  ;;  %2089 = vmatprep.subr.mxu1 %v2156_v1  ;;  %1744 = vst.msk [vmem:[#allocation2 + $0x20] sm:$0xff] %vm1743_vm12, %v2156_v1 }
 0xef2   :  { %1751 = vst.msk [vmem:[#allocation2 + $0x30] sm:$0xff] %vm1748_vm3, %v2156_v1  ;;  %2090 = vmatpush3.msra.mxu1 %v1783_v50  ;;  %1749 = vst.msk [vmem:[#allocation2 + $0x20] sm:$0xff] %vm1748_vm3, %v2156_v1 }
 0xef3   :  { %1740 = vst.msk [vmem:[#allocation2 + $0x28] sm:$0xff] %vm1738_vm9, %v1729_v53  ;;  %2091 = vmatprep.subr.mxu1 %v2156_v1  ;;  %v1679_v59 = vpop.permute.xlu1 %1678  ;;  %v1681_v60 = vpop.permute.xlu0 %1680 }
 0xef4   :  { %1745 = vst.msk [vmem:[#allocation2 + $0x28] sm:$0xff] %vm1743_vm12, %v2156_v1  ;;  %2092 = vmatpush3.msra.mxu1 %v1782_v51 }
 0xef5   :  { %1750 = vst.msk [vmem:[#allocation2 + $0x28] sm:$0xff] %vm1748_vm3, %v2156_v1  ;;  %2093 = vmatprep.subr.mxu1 %v2156_v1  ;;  %v1780_v55 = vld [vmem:[#allocation2 + $0x38] sm:$0xff] }
 0xef6   :  { %2094 = vmatpush3.msra.mxu1 %v1781_v54  ;;  %1693 = vst.msk [vmem:[#allocation2 + $0x10] sm:$0xff] %vm1690_vm10, %v1683_v56  ;;  %1694 = vst.msk [vmem:[#allocation2 + $0x18] sm:$0xff] %vm1690_vm10, %v1685_v57 }
 0xef7   :  { %2095 = vmatprep.subr.mxu1 %v2156_v1  ;;  %1698 = vst.msk [vmem:[#allocation2 + $0x10] sm:$0xff] %vm1695_vm15, %v2156_v1  ;;  %1699 = vst.msk [vmem:[#allocation2 + $0x18] sm:$0xff] %vm1695_vm15, %v2156_v1 }
 0xef8   :  { %2096 = vmatpush3.msra.mxu1 %v1780_v55  ;;  %1691 = vst.msk [vmem:[#allocation2] sm:$0xff] %vm1690_vm10, %v1679_v59  ;;  %1692 = vst.msk [vmem:[#allocation2 + $0x8] sm:$0xff] %vm1690_vm10, %v1681_v60 }
 0xef9   :  { %v1779_v58 = vld [vmem:[#allocation2 + $0x30] sm:$0xff]  ;;  %2097 = vmatprep.subr.mxu1 %v2156_v1  ;;  %1696 = vst.msk [vmem:[#allocation2] sm:$0xff] %vm1695_vm15, %v2156_v1  ;;  %1697 = vst.msk [vmem:[#allocation2 + $0x8] sm:$0xff] %vm1695_vm15, %v2156_v1  ;;  %v1777_v62 = vld [vmem:[#allocation2 + $0x20] sm:$0xff] }
 0xefa   :  { %2098 = vmatpush3.msra.mxu1 %v1779_v58 }
 0xefb   :  { %2099 = vmatprep.subr.mxu1 %v2156_v1 }
 0xefc   :  { %v1778_v61 = vld [vmem:[#allocation2 + $0x28] sm:$0xff] }
 0xefd   :  { %2100 = vmatpush3.msra.mxu1 %v1778_v61 }
 0xefe   :  { %2101 = vmatprep.subr.mxu1 %v2156_v1  ;;  %v1776_v63 = vld [vmem:[#allocation2 + $0x18] sm:$0xff]  ;;  %v1775_v0 = vld [vmem:[#allocation2 + $0x10] sm:$0xff] }
 0xeff   :  { %2102 = vmatpush3.msra.mxu1 %v1777_v62 }
 0xf00   :  { %2103 = vmatprep.subr.mxu1 %v2156_v1  ;;  %v1774_v2 = vld [vmem:[#allocation2 + $0x8] sm:$0xff]  ;;  %v1773_v3 = vld [vmem:[#allocation2] sm:$0xff]  ;;  %v1788_v5 = vpop.permute.xlu0 %1787 }
 0xf01   :  { %2104 = vmatpush3.msra.mxu1 %v1776_v63 }
 0xf02   :  { %2105 = vmatprep.subr.mxu1 %v2156_v1 }
 0xf03   :  { %2106 = vmatpush3.msra.mxu1 %v1775_v0 }
 0xf04   :  { %2107 = vmatprep.subr.mxu1 %v2156_v1 }
 0xf05   :  { %2108 = vmatpush3.msra.mxu1 %v1774_v2 }
 0xf06   :  { %2109 = vmatprep.subr.mxu1 %v2156_v1 }
 0xf07   :  { %2110 = vmatpush3.msra.mxu1 %v1773_v3 }
 0xf08   :  { %2112 = vmatmul.mubr.msk.f32.vlgmr.msra.gmra.mxu1 %vm2822_vm4, %v1771_v4 }
 0xfc8   :  { %v1859_v6 = vpop.f32.mrf.mxu1 }
 0xfc9   :  { %v1860_v7 = vadd.f32 %v1859_v6, %v1788_v5 }
 0xfca   :  { %v2113_v8 = vpop.f32.mrf.mxu1 }
 0xfcb   :  { %1864 = vst.msk [vmem:[#allocation4] sm:$0xf] %vm1863_vm0, %v1860_v7 }
 0xfcc   :  { %2143 = shalt.err (!%p2140_p4)
}
 0xfcd   :  { %1874 = dma.vmem_to_hbm [thread:$0]  %s1872_s5, 64, %s2815_s2, [#allocation5]  }
 0xfce   :  { %2152 = dma.done.wait [#allocation5], 64  }
 0xfcf   :  { %2153 = vsyncadd [#allocation5], 4294967232 }
 0xfd0   :  { %1878 = vsyncpa [#allocation5], 1 }

</bundles_post_ra>
